<compile_context>
chip_gen: v6e
topology: v6e:2x2x1
jax: 0.10.0
libtpu: 0.0.40
codegen_flags: <defaults>
</compile_context>

<pallas_src>
import jax
import jax.numpy as jnp
import numpy as np
from jax import lax
from jax.experimental import pallas as pl
from jax.experimental.pallas import tpu as pltpu


# ------------------------------ fused kernel --------------------------------
#
# In-kernel layouts (spatial structure lives in the packed weights):
#   conv1 out out1 : (28, 512)  lane = 256*dw + 16*q + c  (= conv1[r, 2q+dw, c])
#   pool1     p1   : (14, 256)  lane = 16*q + c
#   conv2 out cc   : (10, 256)  lane = 128*(ow%2) + 20*(ow//2) + n
#   pool2     p2   : (5, 128)   lane = 20*pw + n
#   fc1/fc2        : (1, 128)
# Padded weight rows/cols are exactly zero, so padded lanes stay zero through
# every layer and never leak into the valid logits.

def dnn_fused_kernel(img_ref, w1w_ref, w2w_ref, wfc_ref, bias_ref, o_ref):
    f32 = jnp.float32
    bf16 = jnp.bfloat16

    img = img_ref[...]                                            # (32, 32) f32

    # ---- conv1: 5 kh-tap matmuls, two independent accumulator chains -------
    def c1(kh):
        return jnp.dot(img[kh:kh + 28, :].astype(bf16), w1w_ref[kh],
                       preferred_element_type=f32)                # (28, 512)

    acc_a = c1(0)
    acc_b = c1(1)
    acc_a = acc_a + c1(2)
    acc_b = acc_b + c1(3)
    acc_a = acc_a + c1(4)
    out1 = acc_a + acc_b                                          # (28, 512)

    # ---- max-pool 2x2 (+ conv1 bias + relu) ---------------------------------
    hm = jnp.maximum(out1[:, 0:256], out1[:, 256:512])            # width pairs
    hmr = hm.reshape(14, 2, 256)
    pooled = jnp.maximum(hmr[:, 0, :], hmr[:, 1, :])              # height pairs
    p1 = jnp.maximum(pooled + bias_ref[0:1, :], 0.0)              # (14, 256)

    # ---- conv2: one matmul (kh taps stacked along N) + shifted-row sum ------
    out2 = jnp.dot(p1.astype(bf16), w2w_ref[...],
                   preferred_element_type=f32)                    # (14, 1280)
    cc = out2[0:10, 0:256]
    for kh in range(1, 5):
        cc = cc + out2[kh:kh + 10, 256 * kh:256 * (kh + 1)]       # (10, 256)
    # [Dropout2d = identity in eval mode]

    # ---- max-pool 2x2 (+ conv2 bias + relu) ---------------------------------
    wp = jnp.maximum(cc[:, 0:128], cc[:, 128:256])                # width pairs
    wpr = wp.reshape(5, 2, 128)
    hp = jnp.maximum(wpr[:, 0, :], wpr[:, 1, :])                  # height pairs
    p2 = jnp.maximum(hp + bias_ref[1:2, 0:128], 0.0)              # (5, 128)

    # ---- fc1 (500 -> 50): 5 per-row dots, two independent accum chains ------
    def f1(ph):
        return jnp.dot(p2[ph:ph + 1, :].astype(bf16), wfc_ref[ph],
                       preferred_element_type=f32)                # (1, 128)

    ha = f1(0)
    hb = f1(1)
    ha = ha + f1(2)
    hb = hb + f1(3)
    ha = ha + f1(4)
    h1 = jnp.maximum(ha + hb + bias_ref[2:3, 0:128], 0.0)         # (1, 128)
    # [F.dropout = identity in eval mode]

    # ---- fc2 (50 -> 10) ------------------------------------------------------
    y = jnp.dot(h1.astype(bf16), wfc_ref[5], preferred_element_type=f32)
    y = y + bias_ref[3:4, 0:128]
    o_ref[...] = jnp.broadcast_to(y, (8, 128))


_VMEM = pl.BlockSpec(memory_space=pltpu.MemorySpace.VMEM)


def dnn_fused(img2d, params):
    return pl.pallas_call(
        dnn_fused_kernel,
        out_shape=jax.ShapeDtypeStruct((8, 128), jnp.float32),
        in_specs=[_VMEM] * 5,
        out_specs=_VMEM,
    )(img2d, params["w1w"], params["w2w"], params["wfc"], params["bias"])


def dnn_forward(img, params):
    # img: (1, 1, 32, 32) float32 NCHW (as produced by load_img in PyTorch).
    out = dnn_fused(img[0, 0], params)
    return out[0, :10]                                            # (10,) logits


# -------------------------- parameter packing --------------------------------

def pack_params(w1, b1, w2, b2, fw1, fb1, fw2, fb2):
    """Fold conv im2col / pooling layouts into the weights (init-time, numpy)."""
    w1 = np.asarray(w1, np.float32)    # (10, 1, 5, 5)
    b1 = np.asarray(b1, np.float32)    # (10,)
    w2 = np.asarray(w2, np.float32)    # (20, 10, 5, 5)
    b2 = np.asarray(b2, np.float32)    # (20,)
    fw1 = np.asarray(fw1, np.float32)  # (50, 500)  in = c*25 + 5*h + w
    fb1 = np.asarray(fb1, np.float32)  # (50,)
    fw2 = np.asarray(fw2, np.float32)  # (10, 50)
    fb2 = np.asarray(fb2, np.float32)  # (10,)

    # conv1: w1w[kh, col, 256*dw + 16*q + c] = w1[c, 0, kh, col - 2q - dw]
    w1w = np.zeros((5, 32, 512), np.float32)
    for kh in range(5):
        for kw in range(5):
            vec = w1[:, 0, kh, kw]                              # (10,)
            for dw in range(2):
                for q in range(14):
                    col = 2 * q + dw + kw                       # < 32 always
                    base = 256 * dw + 16 * q
                    w1w[kh, col, base:base + 10] = vec

    # conv2: w2w[16*q + c, 256*kh + 128*(ow%2) + 20*(ow//2) + n]
    #          = w2[n, c, kh, q - ow]   (when kw = q - ow is in [0, 5))
    w2w = np.zeros((256, 1280), np.float32)
    for kh in range(5):
        for kw in range(5):
            blk = w2[:, :, kh, kw].T                            # (c=10, n=20)
            for ow in range(10):
                q = ow + kw                                     # < 14 always
                r0 = 16 * q
                c0 = 256 * kh + 128 * (ow % 2) + 20 * (ow // 2)
                w2w[r0:r0 + 10, c0:c0 + 20] = blk

    # fc1 as 5 per-(pool2-row) blocks, fc2 as block 5.
    wfc = np.zeros((6, 128, 128), np.float32)
    for ph in range(5):
        for pw in range(5):
            for n in range(20):
                wfc[ph, 20 * pw + n, 0:50] = fw1[:, n * 25 + 5 * ph + pw]
    wfc[5, 0:50, 0:10] = fw2.T

    # biases: row0 = conv1 bias in (q, c) lanes, row1 = conv2 bias in (pw, n)
    # lanes, row2 = fc1 bias, row3 = fc2 bias.
    bias = np.zeros((4, 256), np.float32)
    for q in range(14):
        bias[0, 16 * q:16 * q + 10] = b1
    for pw in range(5):
        bias[1, 20 * pw:20 * pw + 20] = b2
    bias[2, 0:50] = fb1
    bias[3, 0:10] = fb2

    return dict(
        w1w=jnp.asarray(w1w, jnp.bfloat16),
        w2w=jnp.asarray(w2w, jnp.bfloat16),
        wfc=jnp.asarray(wfc, jnp.bfloat16),
        bias=jnp.asarray(bias, jnp.float32),
    )


def init_params(key):
    ks = jax.random.split(key, 8)

    def u(k, shape, fan_in):
        bound = 1.0 / jnp.sqrt(jnp.float32(fan_in))
        return jax.random.uniform(k, shape, jnp.float32, -bound, bound)

    raw = (u(ks[0], (10, 1, 5, 5), 25), u(ks[1], (10,), 25),     # conv1
           u(ks[2], (20, 10, 5, 5), 250), u(ks[3], (20,), 250),  # conv2
           u(ks[4], (50, 500), 500), u(ks[5], (50,), 500),       # fc1
           u(ks[6], (10, 50), 50), u(ks[7], (10,), 50))          # fc2
    return pack_params(*raw), raw


# ------------------------ pure-JAX reference (f32) ---------------------------

def dnn_reference(img, raw):
    w1, b1, w2, b2, fw1, fb1, fw2, fb2 = raw
    dn = ("NCHW", "OIHW", "NCHW")

    def pool2(x):
        return lax.reduce_window(x, -jnp.inf, lax.max,
                                 (1, 1, 2, 2), (1, 1, 2, 2), "VALID")

    x = lax.conv_general_dilated(img, w1, (1, 1), "VALID", dimension_numbers=dn)
    x = jnp.maximum(pool2(x + b1.reshape(1, -1, 1, 1)), 0.0)
    x = lax.conv_general_dilated(x, w2, (1, 1), "VALID", dimension_numbers=dn)
    x = jnp.maximum(pool2(x + b2.reshape(1, -1, 1, 1)), 0.0)
    x = x.reshape(1, 500)
    x = jnp.maximum(x @ fw1.T + fb1, 0.0)
    x = x @ fw2.T + fb2
    return x[0]


if __name__ == "__main__":
    key = jax.random.PRNGKey(0)
    k_img, k_par = jax.random.split(key)

    # "image" after Resize((32,32)) + ToTensor(): values in [0, 1], NCHW.
    img = jax.random.uniform(k_img, (1, 1, 32, 32), jnp.float32)
    params, raw = init_params(k_par)

    out = jax.jit(dnn_forward)(img, params)
    out = jax.block_until_ready(out)
    assert out.shape == (10,) and out.dtype == jnp.float32
    assert bool(jnp.all(jnp.isfinite(out)))

    ref = dnn_reference(img, raw)
    max_err = float(jnp.max(jnp.abs(out - ref)))
    assert max_err < 0.05, f"mismatch vs f32 reference: {max_err}"
    print("KERNEL_OK")
</pallas_src>

<mosaic_0001>
module attributes {stable_mosaic.version = 11 : i64} {
  func.func @dnn_fused_kernel(%arg0: memref<32x32xf32, #tpu.memory_space<vmem>>, %arg1: memref<5x32x512xbf16, #tpu.memory_space<vmem>>, %arg2: memref<256x1280xbf16, #tpu.memory_space<vmem>>, %arg3: memref<6x128x128xbf16, #tpu.memory_space<vmem>>, %arg4: memref<4x256xf32, #tpu.memory_space<vmem>>, %arg5: memref<8x128xf32, #tpu.memory_space<vmem>>) attributes {dimension_semantics = [], scalar_prefetch = 0 : i64, scratch_operands = 0 : i64, tpu.core_type = #tpu.core_type<tc>} {
    %c0 = arith.constant 0 : index
    %c0_0 = arith.constant 0 : index
    %0 = vector.load %arg0[%c0, %c0_0] : memref<32x32xf32, #tpu.memory_space<vmem>>, vector<32x32xf32>
    %1 = vector.extract_strided_slice %0 {offsets = [0, 0], sizes = [28, 32], strides = [1, 1]} : vector<32x32xf32> to vector<28x32xf32>
    %2 = arith.truncf %1 : vector<28x32xf32> to vector<28x32xbf16>
    %c0_1 = arith.constant 0 : index
    %c0_2 = arith.constant 0 : index
    %c0_3 = arith.constant 0 : index
    %3 = vector.load %arg1[%c0_1, %c0_2, %c0_3] : memref<5x32x512xbf16, #tpu.memory_space<vmem>>, vector<1x32x512xbf16>
    %4 = vector.shape_cast %3 : vector<1x32x512xbf16> to vector<32x512xbf16>
    %cst = arith.constant dense<0.000000e+00> : vector<28x512xf32>
    %5 = tpu.matmul %2, %4, %cst {dimension_numbers = #tpu.dot_dimension_numbers<[1], [0], [0], [1], [0, 0, 1, 1], [], []>} : vector<28x32xbf16>, vector<32x512xbf16>, vector<28x512xf32> -> vector<28x512xf32>
    %6 = vector.extract_strided_slice %0 {offsets = [1, 0], sizes = [28, 32], strides = [1, 1]} : vector<32x32xf32> to vector<28x32xf32>
    %7 = arith.truncf %6 : vector<28x32xf32> to vector<28x32xbf16>
    %c1 = arith.constant 1 : index
    %c0_4 = arith.constant 0 : index
    %c0_5 = arith.constant 0 : index
    %8 = vector.load %arg1[%c1, %c0_4, %c0_5] : memref<5x32x512xbf16, #tpu.memory_space<vmem>>, vector<1x32x512xbf16>
    %9 = vector.shape_cast %8 : vector<1x32x512xbf16> to vector<32x512xbf16>
    %cst_6 = arith.constant dense<0.000000e+00> : vector<28x512xf32>
    %10 = tpu.matmul %7, %9, %cst_6 {dimension_numbers = #tpu.dot_dimension_numbers<[1], [0], [0], [1], [0, 0, 1, 1], [], []>} : vector<28x32xbf16>, vector<32x512xbf16>, vector<28x512xf32> -> vector<28x512xf32>
    %11 = vector.extract_strided_slice %0 {offsets = [2, 0], sizes = [28, 32], strides = [1, 1]} : vector<32x32xf32> to vector<28x32xf32>
    %12 = arith.truncf %11 : vector<28x32xf32> to vector<28x32xbf16>
    %c2 = arith.constant 2 : index
    %c0_7 = arith.constant 0 : index
    %c0_8 = arith.constant 0 : index
    %13 = vector.load %arg1[%c2, %c0_7, %c0_8] : memref<5x32x512xbf16, #tpu.memory_space<vmem>>, vector<1x32x512xbf16>
    %14 = vector.shape_cast %13 : vector<1x32x512xbf16> to vector<32x512xbf16>
    %cst_9 = arith.constant dense<0.000000e+00> : vector<28x512xf32>
    %15 = tpu.matmul %12, %14, %cst_9 {dimension_numbers = #tpu.dot_dimension_numbers<[1], [0], [0], [1], [0, 0, 1, 1], [], []>} : vector<28x32xbf16>, vector<32x512xbf16>, vector<28x512xf32> -> vector<28x512xf32>
    %16 = arith.addf %5, %15 : vector<28x512xf32>
    %17 = vector.extract_strided_slice %0 {offsets = [3, 0], sizes = [28, 32], strides = [1, 1]} : vector<32x32xf32> to vector<28x32xf32>
    %18 = arith.truncf %17 : vector<28x32xf32> to vector<28x32xbf16>
    %c3 = arith.constant 3 : index
    %c0_10 = arith.constant 0 : index
    %c0_11 = arith.constant 0 : index
    %19 = vector.load %arg1[%c3, %c0_10, %c0_11] : memref<5x32x512xbf16, #tpu.memory_space<vmem>>, vector<1x32x512xbf16>
    %20 = vector.shape_cast %19 : vector<1x32x512xbf16> to vector<32x512xbf16>
    %cst_12 = arith.constant dense<0.000000e+00> : vector<28x512xf32>
    %21 = tpu.matmul %18, %20, %cst_12 {dimension_numbers = #tpu.dot_dimension_numbers<[1], [0], [0], [1], [0, 0, 1, 1], [], []>} : vector<28x32xbf16>, vector<32x512xbf16>, vector<28x512xf32> -> vector<28x512xf32>
    %22 = arith.addf %10, %21 : vector<28x512xf32>
    %23 = vector.extract_strided_slice %0 {offsets = [4, 0], sizes = [28, 32], strides = [1, 1]} : vector<32x32xf32> to vector<28x32xf32>
    %24 = arith.truncf %23 : vector<28x32xf32> to vector<28x32xbf16>
    %c4 = arith.constant 4 : index
    %c0_13 = arith.constant 0 : index
    %c0_14 = arith.constant 0 : index
    %25 = vector.load %arg1[%c4, %c0_13, %c0_14] : memref<5x32x512xbf16, #tpu.memory_space<vmem>>, vector<1x32x512xbf16>
    %26 = vector.shape_cast %25 : vector<1x32x512xbf16> to vector<32x512xbf16>
    %cst_15 = arith.constant dense<0.000000e+00> : vector<28x512xf32>
    %27 = tpu.matmul %24, %26, %cst_15 {dimension_numbers = #tpu.dot_dimension_numbers<[1], [0], [0], [1], [0, 0, 1, 1], [], []>} : vector<28x32xbf16>, vector<32x512xbf16>, vector<28x512xf32> -> vector<28x512xf32>
    %28 = arith.addf %16, %27 : vector<28x512xf32>
    %29 = arith.addf %28, %22 : vector<28x512xf32>
    %30 = vector.extract_strided_slice %29 {offsets = [0, 0], sizes = [28, 256], strides = [1, 1]} : vector<28x512xf32> to vector<28x256xf32>
    %31 = vector.extract_strided_slice %29 {offsets = [0, 256], sizes = [28, 256], strides = [1, 1]} : vector<28x512xf32> to vector<28x256xf32>
    %32 = arith.maximumf %30, %31 : vector<28x256xf32>
    %33 = vector.shape_cast %32 : vector<28x256xf32> to vector<14x2x256xf32>
    %34 = vector.extract_strided_slice %33 {offsets = [0, 0, 0], sizes = [14, 1, 256], strides = [1, 1, 1]} : vector<14x2x256xf32> to vector<14x1x256xf32>
    %35 = vector.shape_cast %34 : vector<14x1x256xf32> to vector<14x256xf32>
    %36 = vector.extract_strided_slice %33 {offsets = [0, 1, 0], sizes = [14, 1, 256], strides = [1, 1, 1]} : vector<14x2x256xf32> to vector<14x1x256xf32>
    %37 = vector.shape_cast %36 : vector<14x1x256xf32> to vector<14x256xf32>
    %38 = arith.maximumf %35, %37 : vector<14x256xf32>
    %c0_16 = arith.constant 0 : index
    %c0_17 = arith.constant 0 : index
    %39 = vector.load %arg4[%c0_16, %c0_17] : memref<4x256xf32, #tpu.memory_space<vmem>>, vector<1x256xf32>
    %40 = vector.broadcast %39 : vector<1x256xf32> to vector<14x256xf32>
    %41 = arith.addf %38, %40 : vector<14x256xf32>
    %cst_18 = arith.constant 0.000000e+00 : f32
    %42 = vector.broadcast %cst_18 : f32 to vector<14x256xf32>
    %43 = arith.maximumf %41, %42 : vector<14x256xf32>
    %44 = arith.truncf %43 : vector<14x256xf32> to vector<14x256xbf16>
    %c0_19 = arith.constant 0 : index
    %c0_20 = arith.constant 0 : index
    %45 = vector.load %arg2[%c0_19, %c0_20] : memref<256x1280xbf16, #tpu.memory_space<vmem>>, vector<256x1280xbf16>
    %cst_21 = arith.constant dense<0.000000e+00> : vector<14x1280xf32>
    %46 = tpu.matmul %44, %45, %cst_21 {dimension_numbers = #tpu.dot_dimension_numbers<[1], [0], [0], [1], [0, 0, 1, 1], [], []>} : vector<14x256xbf16>, vector<256x1280xbf16>, vector<14x1280xf32> -> vector<14x1280xf32>
    %47 = vector.extract_strided_slice %46 {offsets = [0, 0], sizes = [10, 256], strides = [1, 1]} : vector<14x1280xf32> to vector<10x256xf32>
    %48 = vector.extract_strided_slice %46 {offsets = [1, 256], sizes = [10, 256], strides = [1, 1]} : vector<14x1280xf32> to vector<10x256xf32>
    %49 = arith.addf %47, %48 : vector<10x256xf32>
    %50 = vector.extract_strided_slice %46 {offsets = [2, 512], sizes = [10, 256], strides = [1, 1]} : vector<14x1280xf32> to vector<10x256xf32>
    %51 = arith.addf %49, %50 : vector<10x256xf32>
    %52 = vector.extract_strided_slice %46 {offsets = [3, 768], sizes = [10, 256], strides = [1, 1]} : vector<14x1280xf32> to vector<10x256xf32>
    %53 = arith.addf %51, %52 : vector<10x256xf32>
    %54 = vector.extract_strided_slice %46 {offsets = [4, 1024], sizes = [10, 256], strides = [1, 1]} : vector<14x1280xf32> to vector<10x256xf32>
    %55 = arith.addf %53, %54 : vector<10x256xf32>
    %56 = vector.extract_strided_slice %55 {offsets = [0, 0], sizes = [10, 128], strides = [1, 1]} : vector<10x256xf32> to vector<10x128xf32>
    %57 = vector.extract_strided_slice %55 {offsets = [0, 128], sizes = [10, 128], strides = [1, 1]} : vector<10x256xf32> to vector<10x128xf32>
    %58 = arith.maximumf %56, %57 : vector<10x128xf32>
    %59 = vector.shape_cast %58 : vector<10x128xf32> to vector<5x2x128xf32>
    %60 = vector.extract_strided_slice %59 {offsets = [0, 0, 0], sizes = [5, 1, 128], strides = [1, 1, 1]} : vector<5x2x128xf32> to vector<5x1x128xf32>
    %61 = vector.shape_cast %60 : vector<5x1x128xf32> to vector<5x128xf32>
    %62 = vector.extract_strided_slice %59 {offsets = [0, 1, 0], sizes = [5, 1, 128], strides = [1, 1, 1]} : vector<5x2x128xf32> to vector<5x1x128xf32>
    %63 = vector.shape_cast %62 : vector<5x1x128xf32> to vector<5x128xf32>
    %64 = arith.maximumf %61, %63 : vector<5x128xf32>
    %c1_22 = arith.constant 1 : index
    %c0_23 = arith.constant 0 : index
    %65 = vector.load %arg4[%c1_22, %c0_23] : memref<4x256xf32, #tpu.memory_space<vmem>>, vector<1x128xf32>
    %66 = vector.broadcast %65 : vector<1x128xf32> to vector<5x128xf32>
    %67 = arith.addf %64, %66 : vector<5x128xf32>
    %cst_24 = arith.constant 0.000000e+00 : f32
    %68 = vector.broadcast %cst_24 : f32 to vector<5x128xf32>
    %69 = arith.maximumf %67, %68 : vector<5x128xf32>
    %70 = vector.extract_strided_slice %69 {offsets = [0, 0], sizes = [1, 128], strides = [1, 1]} : vector<5x128xf32> to vector<1x128xf32>
    %71 = arith.truncf %70 : vector<1x128xf32> to vector<1x128xbf16>
    %c0_25 = arith.constant 0 : index
    %c0_26 = arith.constant 0 : index
    %c0_27 = arith.constant 0 : index
    %72 = vector.load %arg3[%c0_25, %c0_26, %c0_27] : memref<6x128x128xbf16, #tpu.memory_space<vmem>>, vector<1x128x128xbf16>
    %73 = vector.shape_cast %72 : vector<1x128x128xbf16> to vector<128x128xbf16>
    %cst_28 = arith.constant dense<0.000000e+00> : vector<1x128xf32>
    %74 = tpu.matmul %71, %73, %cst_28 {dimension_numbers = #tpu.dot_dimension_numbers<[1], [0], [0], [1], [0, 0, 1, 1], [], []>} : vector<1x128xbf16>, vector<128x128xbf16>, vector<1x128xf32> -> vector<1x128xf32>
    %75 = vector.extract_strided_slice %69 {offsets = [1, 0], sizes = [1, 128], strides = [1, 1]} : vector<5x128xf32> to vector<1x128xf32>
    %76 = arith.truncf %75 : vector<1x128xf32> to vector<1x128xbf16>
    %c1_29 = arith.constant 1 : index
    %c0_30 = arith.constant 0 : index
    %c0_31 = arith.constant 0 : index
    %77 = vector.load %arg3[%c1_29, %c0_30, %c0_31] : memref<6x128x128xbf16, #tpu.memory_space<vmem>>, vector<1x128x128xbf16>
    %78 = vector.shape_cast %77 : vector<1x128x128xbf16> to vector<128x128xbf16>
    %cst_32 = arith.constant dense<0.000000e+00> : vector<1x128xf32>
    %79 = tpu.matmul %76, %78, %cst_32 {dimension_numbers = #tpu.dot_dimension_numbers<[1], [0], [0], [1], [0, 0, 1, 1], [], []>} : vector<1x128xbf16>, vector<128x128xbf16>, vector<1x128xf32> -> vector<1x128xf32>
    %80 = vector.extract_strided_slice %69 {offsets = [2, 0], sizes = [1, 128], strides = [1, 1]} : vector<5x128xf32> to vector<1x128xf32>
    %81 = arith.truncf %80 : vector<1x128xf32> to vector<1x128xbf16>
    %c2_33 = arith.constant 2 : index
    %c0_34 = arith.constant 0 : index
    %c0_35 = arith.constant 0 : index
    %82 = vector.load %arg3[%c2_33, %c0_34, %c0_35] : memref<6x128x128xbf16, #tpu.memory_space<vmem>>, vector<1x128x128xbf16>
    %83 = vector.shape_cast %82 : vector<1x128x128xbf16> to vector<128x128xbf16>
    %cst_36 = arith.constant dense<0.000000e+00> : vector<1x128xf32>
    %84 = tpu.matmul %81, %83, %cst_36 {dimension_numbers = #tpu.dot_dimension_numbers<[1], [0], [0], [1], [0, 0, 1, 1], [], []>} : vector<1x128xbf16>, vector<128x128xbf16>, vector<1x128xf32> -> vector<1x128xf32>
    %85 = arith.addf %74, %84 : vector<1x128xf32>
    %86 = vector.extract_strided_slice %69 {offsets = [3, 0], sizes = [1, 128], strides = [1, 1]} : vector<5x128xf32> to vector<1x128xf32>
    %87 = arith.truncf %86 : vector<1x128xf32> to vector<1x128xbf16>
    %c3_37 = arith.constant 3 : index
    %c0_38 = arith.constant 0 : index
    %c0_39 = arith.constant 0 : index
    %88 = vector.load %arg3[%c3_37, %c0_38, %c0_39] : memref<6x128x128xbf16, #tpu.memory_space<vmem>>, vector<1x128x128xbf16>
    %89 = vector.shape_cast %88 : vector<1x128x128xbf16> to vector<128x128xbf16>
    %cst_40 = arith.constant dense<0.000000e+00> : vector<1x128xf32>
    %90 = tpu.matmul %87, %89, %cst_40 {dimension_numbers = #tpu.dot_dimension_numbers<[1], [0], [0], [1], [0, 0, 1, 1], [], []>} : vector<1x128xbf16>, vector<128x128xbf16>, vector<1x128xf32> -> vector<1x128xf32>
    %91 = arith.addf %79, %90 : vector<1x128xf32>
    %92 = vector.extract_strided_slice %69 {offsets = [4, 0], sizes = [1, 128], strides = [1, 1]} : vector<5x128xf32> to vector<1x128xf32>
    %93 = arith.truncf %92 : vector<1x128xf32> to vector<1x128xbf16>
    %c4_41 = arith.constant 4 : index
    %c0_42 = arith.constant 0 : index
    %c0_43 = arith.constant 0 : index
    %94 = vector.load %arg3[%c4_41, %c0_42, %c0_43] : memref<6x128x128xbf16, #tpu.memory_space<vmem>>, vector<1x128x128xbf16>
    %95 = vector.shape_cast %94 : vector<1x128x128xbf16> to vector<128x128xbf16>
    %cst_44 = arith.constant dense<0.000000e+00> : vector<1x128xf32>
    %96 = tpu.matmul %93, %95, %cst_44 {dimension_numbers = #tpu.dot_dimension_numbers<[1], [0], [0], [1], [0, 0, 1, 1], [], []>} : vector<1x128xbf16>, vector<128x128xbf16>, vector<1x128xf32> -> vector<1x128xf32>
    %97 = arith.addf %85, %96 : vector<1x128xf32>
    %98 = arith.addf %97, %91 : vector<1x128xf32>
    %c2_45 = arith.constant 2 : index
    %c0_46 = arith.constant 0 : index
    %99 = vector.load %arg4[%c2_45, %c0_46] : memref<4x256xf32, #tpu.memory_space<vmem>>, vector<1x128xf32>
    %100 = arith.addf %98, %99 : vector<1x128xf32>
    %cst_47 = arith.constant 0.000000e+00 : f32
    %101 = vector.broadcast %cst_47 : f32 to vector<1x128xf32>
    %102 = arith.maximumf %100, %101 : vector<1x128xf32>
    %103 = arith.truncf %102 : vector<1x128xf32> to vector<1x128xbf16>
    %c5 = arith.constant 5 : index
    %c0_48 = arith.constant 0 : index
    %c0_49 = arith.constant 0 : index
    %104 = vector.load %arg3[%c5, %c0_48, %c0_49] : memref<6x128x128xbf16, #tpu.memory_space<vmem>>, vector<1x128x128xbf16>
    %105 = vector.shape_cast %104 : vector<1x128x128xbf16> to vector<128x128xbf16>
    %cst_50 = arith.constant dense<0.000000e+00> : vector<1x128xf32>
    %106 = tpu.matmul %103, %105, %cst_50 {dimension_numbers = #tpu.dot_dimension_numbers<[1], [0], [0], [1], [0, 0, 1, 1], [], []>} : vector<1x128xbf16>, vector<128x128xbf16>, vector<1x128xf32> -> vector<1x128xf32>
    %c3_51 = arith.constant 3 : index
    %c0_52 = arith.constant 0 : index
    %107 = vector.load %arg4[%c3_51, %c0_52] : memref<4x256xf32, #tpu.memory_space<vmem>>, vector<1x128xf32>
    %108 = arith.addf %106, %107 : vector<1x128xf32>
    %109 = vector.shape_cast %108 : vector<1x128xf32> to vector<1x128xf32>
    %110 = vector.broadcast %109 : vector<1x128xf32> to vector<8x128xf32>
    %c0_53 = arith.constant 0 : index
    %c0_54 = arith.constant 0 : index
    %111 = vector.load %arg5[%c0_53, %c0_54] : memref<8x128xf32, #tpu.memory_space<vmem>>, vector<8x128xf32>
    tpu.vector_store %arg5[%c0_53, %c0_54], %110 {strides = array<i32>} : memref<8x128xf32, #tpu.memory_space<vmem>>, vector<8x128xf32>,
    return
  }
}

</mosaic_0001>

<bundles_post_ra>
// kernel: dnn_forward.1
= control target key start
LH: loop header
LB: loop body
LE: loop exit
PB: predicated region body
PF: predicated region fallthrough
CT: control target
= control target key end

     0   :  { %10 = vsyncpa [#allocation3], 0  ;;  %s4934_s0 = inlined_call_operand.hbm [shape: f32[32,32], index: 0, kind: input, shape index: {}]   ;;  %s4935_s1 = inlined_call_operand.hbm [shape: bf16[5,32,512], index: 1, kind: input, shape index: {}]   ;;  %s4936_s2 = inlined_call_operand.hbm [shape: bf16[256,1280], index: 2, kind: input, shape index: {}]   ;;  %s4937_s3 = inlined_call_operand.hbm [shape: bf16[6,128,128], index: 3, kind: input, shape index: {}]   ;;  %s4938_s4 = inlined_call_operand.hbm [shape: f32[4,256], index: 4, kind: input, shape index: {}]   ;;  %s4939_s5 = inlined_call_operand.vmem [shape: f32[8,128], index: 5, kind: output, shape index: {}]  }
   0x1   :  { %11 = vsyncpa [#allocation5], 0 }
   0x2   :  { %12 = vsyncpa [#allocation8], 0  ;;  %s4405_s18 = smov [#allocation4]  }
   0x3   :  { %s30_s19 = sshll.u32 %s4405_s18, 4  ;;  %s31_s19 = int_to_ptr.vmem [resolvable:$true] %s30_s19 }
   0x4   :  { %s4307_s20 = scalar_lea.vmem %s31_s19, 5120  ;;  %p4312_p1 = scmp.lt.s32.totalorder %s31_s19, %s31_s19 }
   0x5   :  { %p4308_p0 = scmp.ne.s32.totalorder %s31_s19, %s4307_s20  ;;  %p4313_p2 = scmp.lt.s32.totalorder %s4307_s20, %s4307_s20 }
   0x7   :  { %p4314_p3 = por %p4313_p2, %p4312_p1 }
   0x9   :  { %p4315_p4 = pnand %p4314_p3, %p4308_p0 }
   0xb   :  { %4318 = shalt.err (!%p4315_p4)
}
   0xc   :  { %s4406_s21 = smov 256   ;;  %s4407_s22 = smov 16  }
   0xd   :  { %36 = dma.hbm_to_vmem [thread:$0]  %s4935_s1, 5120, %s31_s19, [#allocation5], %s4406_s21, %s4406_s21, %s4407_s22  }
   0xe   :  { %s4408_s25 = smov [#allocation7]  }
   0xf   :  { %s54_s26 = sshll.u32 %s4408_s25, 4  ;;  %s55_s26 = int_to_ptr.vmem [resolvable:$true] %s54_s26 }
  0x10   :  { %s4327_s27 = scalar_lea.vmem %s55_s26, 6144  ;;  %p4332_p6 = scmp.lt.s32.totalorder %s55_s26, %s55_s26 }
  0x11   :  { %p4328_p5 = scmp.ne.s32.totalorder %s55_s26, %s4327_s27  ;;  %p4333_p7 = scmp.lt.s32.totalorder %s4327_s27, %s4327_s27 }
  0x13   :  { %p4334_p8 = por %p4333_p7, %p4332_p6 }
  0x15   :  { %p4335_p9 = pnand %p4334_p8, %p4328_p5 }
  0x17   :  { %4338 = shalt.err (!%p4335_p9)
}
  0x18   :  { %s4409_s28 = smov 64   ;;  %s4410_s29 = smov 4  }
  0x19   :  { %60 = dma.hbm_to_vmem [thread:$0]  %s4937_s3, 6144, %s55_s26, [#allocation8], %s4409_s28, %s4409_s28, %s4410_s29  }
  0x1a   :  { %s4411_s7 = smov [#allocation2]  }
  0x1b   :  { %s18_s8 = sshll.u32 %s4411_s7, 4  ;;  %s19_s8 = int_to_ptr.vmem [resolvable:$true] %s18_s8 }
  0x1c   :  { %s4347_s1 = scalar_lea.vmem %s19_s8, 512  ;;  %p4352_p11 = scmp.lt.s32.totalorder %s19_s8, %s19_s8 }
  0x1d   :  { %p4348_p10 = scmp.ne.s32.totalorder %s19_s8, %s4347_s1  ;;  %p4353_p12 = scmp.lt.s32.totalorder %s4347_s1, %s4347_s1 }
  0x1f   :  { %p4354_p13 = por %p4353_p12, %p4352_p11 }
  0x21   :  { %p4355_p0 = pnand %p4354_p13, %p4348_p10 }
  0x23   :  { %4358 = shalt.err (!%p4355_p0)
}
  0x24   :  { %s4412_s9 = smov 128   ;;  %s4413_s10 = smov 8  }
  0x25   :  { %24 = dma.hbm_to_vmem [thread:$0]  %s4934_s0, 512, %s19_s8, [#allocation3], %s4412_s9, %s4412_s9, %s4413_s10  }
  0x26   :  { %s4414_s13 = smov [#allocation6]  }
  0x27   :  { %s42_s14 = sshll.u32 %s4414_s13, 4  ;;  %s43_s14 = int_to_ptr.vmem [resolvable:$true] %s42_s14 }
  0x28   :  { %s4367_s3 = scalar_lea.vmem %s43_s14, 20480  ;;  %p4372_p2 = scmp.lt.s32.totalorder %s43_s14, %s43_s14 }
  0x29   :  { %p4368_p1 = scmp.ne.s32.totalorder %s43_s14, %s4367_s3  ;;  %p4373_p3 = scmp.lt.s32.totalorder %s4367_s3, %s4367_s3 }
  0x2b   :  { %p4374_p4 = por %p4373_p3, %p4372_p2 }
  0x2d   :  { %p4375_p5 = pnand %p4374_p4, %p4368_p1 }
  0x2f   :  { %4378 = shalt.err (!%p4375_p5)
}
  0x30   :  { %s4415_s15 = smov 640   ;;  %s4416_s16 = smov 40  }
  0x31   :  { %48 = dma.hbm_to_vmem [thread:$0]  %s4936_s2, 20480, %s43_s14, [#allocation5], %s4415_s15, %s4415_s15, %s4416_s16  }
  0x32   :  { %s4417_s19 = smov [#allocation9]  }
  0x33   :  { %s67_s20 = sshll.u32 %s4417_s19, 4  ;;  %s68_s20 = int_to_ptr.vmem [resolvable:$true] %s67_s20 }
  0x34   :  { %s4387_s0 = scalar_lea.vmem %s68_s20, 128  ;;  %p4392_p7 = scmp.lt.s32.totalorder %s68_s20, %s68_s20 }
  0x35   :  { %p4388_p6 = scmp.ne.s32.totalorder %s68_s20, %s4387_s0  ;;  %p4393_p8 = scmp.lt.s32.totalorder %s4387_s0, %s4387_s0 }
  0x37   :  { %p4394_p9 = por %p4393_p8, %p4392_p7 }
  0x39   :  { %p4395_p10 = pnand %p4394_p9, %p4388_p6 }
  0x3b   :  { %4398 = shalt.err (!%p4395_p10)
}
  0x3c   :  { %70 = dma.hbm_to_vmem [thread:$0]  %s4938_s4, 128, %s68_s20, [#allocation8]  }
  0x3d   :  { %4399 = dma.done.wait [#allocation3], 512  }
  0x3e   :  { %4400 = vsyncadd [#allocation3], 4294966784 }
  0x3f   :  { %4401 = dma.done.wait [#allocation5], 25600  }
  0x40   :  { %4402 = vsyncadd [#allocation5], 4294941696 }
  0x41   :  { %4403 = dma.done.wait [#allocation8], 6272  }
  0x42   :  { %4404 = vsyncadd [#allocation8], 4294961024  ;;  %v4418_v0 = vmov 0   ;;  %v3951_v1 = vld [vmem:[#allocation4 + $0xa4] ss:$16 sps:$4 sm:$0xff]   ;;  %v88_v10 = vld [vmem:[#allocation2 + $0x8] sm:$0xff] }
  0x43   :  { %204 = vmatprep.mubr.bf16.mxu0 %v4418_v0  ;;  %257 = vmatprep.mubr.bf16.mxu1 %v4418_v0  ;;  %v3953_v2 = vld [vmem:[#allocation4 + $0xac] ss:$16 sps:$4 sm:$0xff]   ;;  %v3955_v3 = vld [vmem:[#allocation4 + $0xa0] ss:$16 sps:$4 sm:$0xff]   ;;  %v3956_v4 = vld [vmem:[#allocation4 + $0xa8] ss:$16 sps:$4 sm:$0xff]  }
  0x44   :  { %184 = vmatprep.subr.bf16.mxu0 %v3951_v1  ;;  %237 = vmatprep.subr.bf16.mxu1 %v3953_v2  ;;  %v3957_v5 = vld [vmem:[#allocation4 + $0x84] ss:$16 sps:$4 sm:$0xff]   ;;  %v3959_v6 = vld [vmem:[#allocation4 + $0x8c] ss:$16 sps:$4 sm:$0xff]   ;;  %v3961_v7 = vld [vmem:[#allocation4 + $0x80] ss:$16 sps:$4 sm:$0xff]  }
  0x45   :  { %185 = vmatpush1.bf16.msra.mxu0 %v3955_v3  ;;  %238 = vmatpush1.bf16.msra.mxu1 %v3956_v4  ;;  %v3962_v8 = vld [vmem:[#allocation4 + $0x88] ss:$16 sps:$4 sm:$0xff]   ;;  %v87_v9 = vld [vmem:[#allocation2] sm:$0xff]  ;;  %v89_v11 = vld [vmem:[#allocation2 + $0x10] sm:$0xff]  ;;  %vm121_vm0 = vcmask 1046528   ;;  %vm165_vm1 = vcmask 261120  }
  0x46   :  { %186 = vmatprep.subr.bf16.mxu0 %v3957_v5  ;;  %239 = vmatprep.subr.bf16.mxu1 %v3959_v6  ;;  %v90_v12 = vld [vmem:[#allocation2 + $0x18] sm:$0xff]  ;;  %v4469_v13 = vpack.c.bf16 %v88_v10, %v87_v9  ;;  %v3963_v15 = vld [vmem:[#allocation4 + $0x20] ss:$16 sps:$4 sm:$0xff]   ;;  %v3965_v16 = vld [vmem:[#allocation4 + $0x24] ss:$16 sps:$4 sm:$0xff]   ;;  %vm774_vm2 = vcmask 1045504  }
  0x47   :  { %v4471_v14 = vpack.c.bf16 %v90_v12, %v89_v11  ;;  %v3966_v18 = vld [vmem:[#allocation4 + $0x28] ss:$16 sps:$4 sm:$0xff]   ;;  %v3968_v20 = vld [vmem:[#allocation4 + $0x2c] ss:$16 sps:$4 sm:$0xff]   ;;  %v3971_v22 = vld [vmem:[#allocation4 + $0x4] ss:$16 sps:$4 sm:$0xff]  }
  0x48   :  { %v122_v17 = vrot.slane %v4469_v13, 1  ;;  %v3974_v23 = vld [vmem:[#allocation4 + $0xc] ss:$16 sps:$4 sm:$0xff]   ;;  %v3969_v24 = vld [vmem:[#allocation4] ss:$16 sps:$4 sm:$0xff]   ;;  %v775_v28 = vrot.slane %v4469_v13, 2 }
  0x49   :  { %187 = vmatpush1.bf16.msra.mxu0 %v3961_v7  ;;  %240 = vmatpush1.bf16.msra.mxu1 %v3962_v8  ;;  %v123_v19 = vrot.slane %v4471_v14, 1  ;;  %v3972_v25 = vld [vmem:[#allocation4 + $0x8] ss:$16 sps:$4 sm:$0xff]   ;;  %v3977_v26 = vld [vmem:[#allocation4 + $0xe4] ss:$16 sps:$4 sm:$0xff]   ;;  %v4482_v29 = vrot.slane %v4471_v14, 2 }
  0x4a   :  { %336 = vmatprep.subr.bf16.mxu0 %v3965_v16  ;;  %389 = vmatprep.subr.bf16.mxu1 %v3968_v20  ;;  %v3980_v27 = vld [vmem:[#allocation4 + $0xec] ss:$16 sps:$4 sm:$0xff]   ;;  %v3975_v31 = vld [vmem:[#allocation4 + $0xe0] ss:$16 sps:$4 sm:$0xff]   ;;  %v3978_v32 = vld [vmem:[#allocation4 + $0xe8] ss:$16 sps:$4 sm:$0xff]  }
  0x4b   :  { %v124_v21 = vsel %vm121_vm0, %v122_v17, %v123_v19  ;;  %v4486_v30 = vsel %vm774_vm2, %v775_v28, %v4482_v29  ;;  %v3983_v33 = vld [vmem:[#allocation4 + $0xc4] ss:$16 sps:$4 sm:$0xff]   ;;  %v3981_v34 = vld [vmem:[#allocation4 + $0xc0] ss:$16 sps:$4 sm:$0xff]   ;;  %v3984_v35 = vld [vmem:[#allocation4 + $0xc8] ss:$16 sps:$4 sm:$0xff]  }
  0x4c   :  { %3480 = vmatmul.mubr.msk.bf16.vlgmr.msra.gmra.mxu0 %vm165_vm1, %v124_v21  ;;  %3482 = vmatmul.mubr.msk.bf16.vlgmr.msra.gmra.mxu1 %vm165_vm1, %v124_v21  ;;  %v3986_v36 = vld [vmem:[#allocation4 + $0xcc] ss:$16 sps:$4 sm:$0xff]   ;;  %v440_v37 = vshrl.u32 %v4469_v13, 16  ;;  %v3989_v38 = vld [vmem:[#allocation4 + $0x64] ss:$16 sps:$4 sm:$0xff]   ;;  %v443_v40 = vshll.u32 %v4469_v13, 16 }
  0x4d   :  { %337 = vmatpush1.bf16.msra.mxu0 %v3963_v15  ;;  %390 = vmatpush1.bf16.msra.mxu1 %v3966_v18  ;;  %v3992_v39 = vld [vmem:[#allocation4 + $0x6c] ss:$16 sps:$4 sm:$0xff]   ;;  %v447_v41 = vshrl.u32 %v4471_v14, 16  ;;  %v450_v42 = vshll.u32 %v4471_v14, 16  ;;  %vm439_vm3 = vsmask.f32 6400 }
  0x4e   :  { %214 = vmatprep.mubr.bf16.mxu0 %v4418_v0  ;;  %267 = vmatprep.mubr.bf16.mxu1 %v4418_v0  ;;  %v442_v43 = vrot.slane %v440_v37, 1  ;;  %v445_v44 = vrot.slane %v443_v40, 2  ;;  %v3987_v49 = vld [vmem:[#allocation4 + $0x60] ss:$16 sps:$4 sm:$0xff]   ;;  %v3990_v50 = vld [vmem:[#allocation4 + $0x68] ss:$16 sps:$4 sm:$0xff]  }
  0x4f   :  { %338 = vmatprep.subr.bf16.mxu0 %v3971_v22  ;;  %391 = vmatprep.subr.bf16.mxu1 %v3974_v23  ;;  %v449_v45 = vrot.slane %v447_v41, 1  ;;  %v452_v46 = vrot.slane %v450_v42, 2  ;;  %v3995_v52 = vld [vmem:[#allocation4 + $0x44] ss:$16 sps:$4 sm:$0xff]   ;;  %v3998_v53 = vld [vmem:[#allocation4 + $0x4c] ss:$16 sps:$4 sm:$0xff]  }
  0x50   :  { %v446_v47 = vor.u32 %v445_v44, %v442_v43  ;;  %v3993_v54 = vld [vmem:[#allocation4 + $0x40] ss:$16 sps:$4 sm:$0xff]   ;;  %v3996_v55 = vld [vmem:[#allocation4 + $0x48] ss:$16 sps:$4 sm:$0xff]   ;;  %v4001_v56 = vld [vmem:[#allocation4 + $0x124] ss:$16 sps:$4 sm:$0xff]  }
  0x51   :  { %339 = vmatpush1.bf16.msra.mxu0 %v3969_v24  ;;  %392 = vmatpush1.bf16.msra.mxu1 %v3972_v25  ;;  %v453_v48 = vor.u32 %v452_v46, %v449_v45  ;;  %v4004_v57 = vld [vmem:[#allocation4 + $0x12c] ss:$16 sps:$4 sm:$0xff]   ;;  %v608_v58 = vrot.slane %v443_v40, 1  ;;  %v610_v60 = vrot.slane %v450_v42, 1  ;;  %vm607_vm4 = vsmask.f32 7424 }
  0x52   :  { %513 = vmatprep.subr.bf16.mxu0 %v3977_v26  ;;  %566 = vmatprep.subr.bf16.mxu1 %v3980_v27  ;;  %v3999_v61 = vld [vmem:[#allocation4 + $0x120] ss:$16 sps:$4 sm:$0xff]   ;;  %v4002_v62 = vld [vmem:[#allocation4 + $0x128] ss:$16 sps:$4 sm:$0xff]   ;;  %v4007_v1 = vld [vmem:[#allocation4 + $0x104] ss:$16 sps:$4 sm:$0xff]  }
  0x53   :  { %v454_v51 = vsel %vm439_vm3, %v446_v47, %v453_v48  ;;  %v609_v59 = vor.u32 %v608_v58, %v440_v37  ;;  %v4010_v2 = vld [vmem:[#allocation4 + $0x10c] ss:$16 sps:$4 sm:$0xff]   ;;  %v4005_v3 = vld [vmem:[#allocation4 + $0x100] ss:$16 sps:$4 sm:$0xff]   ;;  %v4008_v4 = vld [vmem:[#allocation4 + $0x108] ss:$16 sps:$4 sm:$0xff]   ;;  %v612_v5 = vor.u32 %v610_v60, %v447_v41 }
  0x54   :  { %3481 = vmatmul.mubr.msk.bf16.gmra.mxu0 %vm165_vm1, %v123_v19  ;;  %3483 = vmatmul.mubr.msk.bf16.gmra.mxu1 %vm165_vm1, %v123_v19  ;;  %v4013_v6 = vld [vmem:[#allocation6 + $0x234] ss:$40 sps:$4 sm:$0xff]   ;;  %v4011_v8 = vld [vmem:[#allocation6 + $0x230] ss:$40 sps:$4 sm:$0xff]   ;;  %v4019_v10 = vld [vmem:[#allocation6 + $0x1e4] ss:$40 sps:$4 sm:$0xff]  }
  0x55   :  { %356 = vmatprep.mubr.bf16.mxu0 %v4418_v0  ;;  %409 = vmatprep.mubr.bf16.mxu1 %v4418_v0  ;;  %v611_v63 = vsel %vm607_vm4, %v609_v59, %v610_v60  ;;  %v4016_v7 = vld [vmem:[#allocation6 + $0x23c] ss:$40 sps:$4 sm:$0xff]   ;;  %v4014_v9 = vld [vmem:[#allocation6 + $0x238] ss:$40 sps:$4 sm:$0xff]   ;;  %v4022_v11 = vld [vmem:[#allocation6 + $0x1ec] ss:$40 sps:$4 sm:$0xff]  }
  0x56   :  { %v4017_v12 = vld [vmem:[#allocation6 + $0x1e0] ss:$40 sps:$4 sm:$0xff]   ;;  %v4023_v15 = vld [vmem:[#allocation6 + $0x190] ss:$40 sps:$4 sm:$0xff]   ;;  %v4031_v17 = vld [vmem:[#allocation6 + $0x144] ss:$40 sps:$4 sm:$0xff]  }
  0x57   :  { %v4026_v16 = vld [vmem:[#allocation6 + $0x198] ss:$40 sps:$4 sm:$0xff]   ;;  %v4034_v18 = vld [vmem:[#allocation6 + $0x14c] ss:$40 sps:$4 sm:$0xff]   ;;  %v4032_v20 = vld [vmem:[#allocation6 + $0x148] ss:$40 sps:$4 sm:$0xff]  }
  0x58   :  { %v4029_v19 = vld [vmem:[#allocation6 + $0x140] ss:$40 sps:$4 sm:$0xff]   ;;  %v4037_v21 = vld [vmem:[#allocation6 + $0xf4] ss:$40 sps:$4 sm:$0xff]   ;;  %v4035_v23 = vld [vmem:[#allocation6 + $0xf0] ss:$40 sps:$4 sm:$0xff]  }
  0x59   :  { %v4040_v22 = vld [vmem:[#allocation6 + $0xfc] ss:$40 sps:$4 sm:$0xff]   ;;  %v4038_v24 = vld [vmem:[#allocation6 + $0xf8] ss:$40 sps:$4 sm:$0xff]   ;;  %v4046_v26 = vld [vmem:[#allocation6 + $0xac] ss:$40 sps:$4 sm:$0xff]  }
  0x5a   :  { %v4043_v25 = vld [vmem:[#allocation6 + $0xa4] ss:$40 sps:$4 sm:$0xff]   ;;  %v4041_v27 = vld [vmem:[#allocation6 + $0xa0] ss:$40 sps:$4 sm:$0xff]   ;;  %v4061_v37 = vld [vmem:[#allocation6 + $0x4b4] ss:$40 sps:$4 sm:$0xff]  }
  0x5b   :  { %v4044_v28 = vld [vmem:[#allocation6 + $0xa8] ss:$40 sps:$4 sm:$0xff]   ;;  %v4062_v40 = vld [vmem:[#allocation6 + $0x4b8] ss:$40 sps:$4 sm:$0xff]   ;;  %v4067_v41 = vld [vmem:[#allocation6 + $0x464] ss:$40 sps:$4 sm:$0xff]  }
  0x5c   :  { %3492 = vmatmul.mubr.msk.bf16.vlgmr.msra.gmra.mxu0 %vm165_vm1, %v4469_v13  ;;  %3494 = vmatmul.mubr.msk.bf16.vlgmr.msra.gmra.mxu1 %vm165_vm1, %v4469_v13  ;;  %v4020_v13 = vld [vmem:[#allocation6 + $0x1e8] ss:$40 sps:$4 sm:$0xff]   ;;  %v4070_v42 = vld [vmem:[#allocation6 + $0x46c] ss:$40 sps:$4 sm:$0xff]   ;;  %v4076_v46 = vld [vmem:[#allocation6 + $0x41c] ss:$40 sps:$4 sm:$0xff]  }
  0x5d   :  { %514 = vmatpush1.bf16.msra.mxu0 %v3975_v31  ;;  %567 = vmatpush1.bf16.msra.mxu1 %v3978_v32  ;;  %v4047_v31 = vld [vmem:[#allocation6 + $0x50] ss:$40 sps:$4 sm:$0xff]   ;;  %v4065_v43 = vld [vmem:[#allocation6 + $0x460] ss:$40 sps:$4 sm:$0xff]   ;;  %v4073_v45 = vld [vmem:[#allocation6 + $0x414] ss:$40 sps:$4 sm:$0xff]  }
  0x5e   :  { %366 = vmatprep.mubr.bf16.mxu0 %v4418_v0  ;;  %419 = vmatprep.mubr.bf16.mxu1 %v4418_v0  ;;  %v4050_v32 = vld [vmem:[#allocation6 + $0x58] ss:$40 sps:$4 sm:$0xff]   ;;  %v4068_v44 = vld [vmem:[#allocation6 + $0x468] ss:$40 sps:$4 sm:$0xff]   ;;  %v4091_v59 = vld [vmem:[#allocation6 + $0x324] ss:$40 sps:$4 sm:$0xff]  }
  0x5f   :  { %515 = vmatprep.subr.bf16.mxu0 %v3983_v33  ;;  %568 = vmatprep.subr.bf16.mxu1 %v3986_v36  ;;  %v4055_v33 = vld [vmem:[#allocation6 + $0x4] ss:$40 sps:$4 sm:$0xff]   ;;  %v4056_v36 = vld [vmem:[#allocation6 + $0x8] ss:$40 sps:$4 sm:$0xff]   ;;  %vm1578_vm5 = vcmask 1041409   ;;  %vm1581_vm6 = vcmask 1042434  }
  0x60   :  { %v4071_v47 = vld [vmem:[#allocation6 + $0x410] ss:$40 sps:$4 sm:$0xff]   ;;  %v4094_v60 = vld [vmem:[#allocation6 + $0x32c] ss:$40 sps:$4 sm:$0xff]   ;;  %vm1584_vm7 = vcmask 1043459   ;;  %vm1587_vm8 = vcmask 1044484  }
  0x61   :  { %516 = vmatpush1.bf16.msra.mxu0 %v3981_v34  ;;  %569 = vmatpush1.bf16.msra.mxu1 %v3984_v35  ;;  %v4058_v34 = vld [vmem:[#allocation6 + $0xc] ss:$40 sps:$4 sm:$0xff]   ;;  %v4053_v35 = vld [vmem:[#allocation6] ss:$40 sps:$4 sm:$0xff]   ;;  %vm1590_vm9 = vcmask 1045509   ;;  %vm1593_vm10 = vcmask 1046534  }
  0x62   :  { %671 = vmatprep.subr.bf16.mxu0 %v3989_v38  ;;  %724 = vmatprep.subr.bf16.mxu1 %v3992_v39  ;;  %v4064_v38 = vld [vmem:[#allocation6 + $0x4bc] ss:$40 sps:$4 sm:$0xff]   ;;  %v4059_v39 = vld [vmem:[#allocation6 + $0x4b0] ss:$40 sps:$4 sm:$0xff]   ;;  %vm1596_vm11 = vcmask 1047559   ;;  %vm4421_vm12 = vmmov 0  }
  0x63   :  { %vm2693_vm13 = vcmask 1044480   ;;  %vm2712_vm14 = vcmask 1043456  }
  0x64   :  { %3493 = vmatmul.mubr.msk.bf16.gmra.mxu0 %vm165_vm1, %v4471_v14  ;;  %3495 = vmatmul.mubr.msk.bf16.gmra.mxu1 %vm165_vm1, %v4471_v14  ;;  %v4028_v14 = vld [vmem:[#allocation6 + $0x19c] ss:$40 sps:$4 sm:$0xff]  }
  0x65   :  { %533 = vmatprep.mubr.bf16.mxu0 %v4418_v0  ;;  %586 = vmatprep.mubr.bf16.mxu1 %v4418_v0 }
  0x6c   :  { %3504 = vmatmul.mubr.msk.bf16.vlgmr.msra.gmra.mxu0 %vm165_vm1, %v454_v51  ;;  %3506 = vmatmul.mubr.msk.bf16.vlgmr.msra.gmra.mxu1 %vm165_vm1, %v454_v51  ;;  %v4077_v51 = vld [vmem:[#allocation6 + $0x3c0] ss:$40 sps:$4 sm:$0xff]  }
  0x6d   :  { %672 = vmatpush1.bf16.msra.mxu0 %v3987_v49  ;;  %725 = vmatpush1.bf16.msra.mxu1 %v3990_v50  ;;  %v4079_v49 = vld [vmem:[#allocation6 + $0x3c4] ss:$40 sps:$4 sm:$0xff]  }
  0x6e   :  { %543 = vmatprep.mubr.bf16.mxu0 %v4418_v0  ;;  %596 = vmatprep.mubr.bf16.mxu1 %v4418_v0  ;;  %v4082_v50 = vld [vmem:[#allocation6 + $0x3cc] ss:$40 sps:$4 sm:$0xff]  }
  0x6f   :  { %673 = vmatprep.subr.bf16.mxu0 %v3995_v52  ;;  %726 = vmatprep.subr.bf16.mxu1 %v3998_v53  ;;  %v4080_v52 = vld [vmem:[#allocation6 + $0x3c8] ss:$40 sps:$4 sm:$0xff]   ;;  %v4085_v53 = vld [vmem:[#allocation6 + $0x374] ss:$40 sps:$4 sm:$0xff]  }
  0x71   :  { %674 = vmatpush1.bf16.msra.mxu0 %v3993_v54  ;;  %727 = vmatpush1.bf16.msra.mxu1 %v3996_v55  ;;  %v4088_v54 = vld [vmem:[#allocation6 + $0x37c] ss:$40 sps:$4 sm:$0xff]   ;;  %v4083_v55 = vld [vmem:[#allocation6 + $0x370] ss:$40 sps:$4 sm:$0xff]  }
  0x72   :  { %836 = vmatprep.subr.bf16.mxu0 %v4001_v56  ;;  %889 = vmatprep.subr.bf16.mxu1 %v4004_v57  ;;  %v4086_v56 = vld [vmem:[#allocation6 + $0x378] ss:$40 sps:$4 sm:$0xff]  }
  0x74   :  { %3505 = vmatmul.mubr.msk.bf16.gmra.mxu0 %vm165_vm1, %v453_v48  ;;  %3507 = vmatmul.mubr.msk.bf16.gmra.mxu1 %vm165_vm1, %v453_v48  ;;  %v4074_v48 = vld [vmem:[#allocation6 + $0x418] ss:$40 sps:$4 sm:$0xff]  }
  0x75   :  { %691 = vmatprep.mubr.bf16.mxu0 %v4418_v0  ;;  %744 = vmatprep.mubr.bf16.mxu1 %v4418_v0 }
  0x7c   :  { %3516 = vmatmul.mubr.msk.bf16.vlgmr.msra.gmra.mxu0 %vm165_vm1, %v611_v63  ;;  %3518 = vmatmul.mubr.msk.bf16.vlgmr.msra.gmra.mxu1 %vm165_vm1, %v611_v63  ;;  %v4089_v63 = vld [vmem:[#allocation6 + $0x320] ss:$40 sps:$4 sm:$0xff]  }
  0x7d   :  { %837 = vmatpush1.bf16.msra.mxu0 %v3999_v61  ;;  %890 = vmatpush1.bf16.msra.mxu1 %v4002_v62 }
  0x7e   :  { %701 = vmatprep.mubr.bf16.mxu0 %v4418_v0  ;;  %754 = vmatprep.mubr.bf16.mxu1 %v4418_v0 }
  0x7f   :  { %838 = vmatprep.subr.bf16.mxu0 %v4007_v1  ;;  %891 = vmatprep.subr.bf16.mxu1 %v4010_v2  ;;  %v4092_v1 = vld [vmem:[#allocation6 + $0x328] ss:$40 sps:$4 sm:$0xff]  }
  0x81   :  { %839 = vmatpush1.bf16.msra.mxu0 %v4005_v3  ;;  %892 = vmatpush1.bf16.msra.mxu1 %v4008_v4  ;;  %v4097_v4 = vld [vmem:[#allocation6 + $0x2d4] ss:$40 sps:$4 sm:$0xff]  }
  0x82   :  { %2436 = vmatprep.subr.bf16.mxu0 %v4013_v6  ;;  %2479 = vmatprep.subr.bf16.mxu1 %v4016_v7 }
  0x84   :  { %3517 = vmatmul.mubr.msk.bf16.gmra.mxu0 %vm165_vm1, %v612_v5  ;;  %3519 = vmatmul.mubr.msk.bf16.gmra.mxu1 %vm165_vm1, %v612_v5  ;;  %v4100_v5 = vld [vmem:[#allocation6 + $0x2dc] ss:$40 sps:$4 sm:$0xff]  }
  0x85   :  { %856 = vmatprep.mubr.bf16.mxu0 %v4418_v0  ;;  %909 = vmatprep.mubr.bf16.mxu1 %v4418_v0 }
  0x8c   :  { %3528 = vmatmul.mubr.msk.bf16.vlgmr.msra.gmra.mxu0 %vm165_vm1, %v4486_v30  ;;  %3530 = vmatmul.mubr.msk.bf16.vlgmr.msra.gmra.mxu1 %vm165_vm1, %v4486_v30  ;;  %v4052_v30 = vld [vmem:[#allocation6 + $0x5c] ss:$40 sps:$4 sm:$0xff]  }
  0x8d   :  { %866 = vmatprep.mubr.bf16.mxu0 %v4418_v0  ;;  %919 = vmatprep.mubr.bf16.mxu1 %v4418_v0  ;;  %v4025_v0 = vld [vmem:[#allocation6 + $0x194] ss:$40 sps:$4 sm:$0xff]  }
  0x8e   :  { %2437 = vmatpush1.bf16.msra.mxu0 %v4011_v8  ;;  %2480 = vmatpush1.bf16.msra.mxu1 %v4014_v9  ;;  %v4095_v8 = vld [vmem:[#allocation6 + $0x2d0] ss:$40 sps:$4 sm:$0xff]  }
  0x8f   :  { %2438 = vmatprep.subr.bf16.mxu0 %v4019_v10  ;;  %2481 = vmatprep.subr.bf16.mxu1 %v4022_v11  ;;  %v4098_v9 = vld [vmem:[#allocation6 + $0x2d8] ss:$40 sps:$4 sm:$0xff]  }
  0x92   :  { %2439 = vmatpush1.bf16.msra.mxu0 %v4017_v12  ;;  %2482 = vmatpush1.bf16.msra.mxu1 %v4020_v13  ;;  %v4101_v12 = vld [vmem:[#allocation6 + $0x280] ss:$40 sps:$4 sm:$0xff]   ;;  %v4103_v13 = vld [vmem:[#allocation6 + $0x284] ss:$40 sps:$4 sm:$0xff]  }
  0x93   :  { %2440 = vmatprep.subr.bf16.mxu0 %v4025_v0  ;;  %2483 = vmatprep.subr.bf16.mxu1 %v4028_v14  ;;  %v4104_v0 = vld [vmem:[#allocation6 + $0x288] ss:$40 sps:$4 sm:$0xff]   ;;  %v4106_v14 = vld [vmem:[#allocation6 + $0x28c] ss:$40 sps:$4 sm:$0xff]  }
  0x94   :  { %3529 = vmatmul.mubr.msk.bf16.gmra.mxu0 %vm165_vm1, %v4482_v29  ;;  %3531 = vmatmul.mubr.msk.bf16.gmra.mxu1 %vm165_vm1, %v4482_v29  ;;  %v4049_v29 = vld [vmem:[#allocation6 + $0x54] ss:$40 sps:$4 sm:$0xff]  }
  0x96   :  { %2441 = vmatpush1.bf16.msra.mxu0 %v4023_v15  ;;  %2484 = vmatpush1.bf16.msra.mxu1 %v4026_v16 }
  0x97   :  { %2442 = vmatprep.subr.bf16.mxu0 %v4031_v17  ;;  %2485 = vmatprep.subr.bf16.mxu1 %v4034_v18 }
  0x9a   :  { %2443 = vmatpush1.bf16.msra.mxu0 %v4029_v19  ;;  %2486 = vmatpush1.bf16.msra.mxu1 %v4032_v20  ;;  %v4109_v19 = vld [vmem:[#allocation6 + $0x244] ss:$40 sps:$4 sm:$0xff]  }
  0x9b   :  { %2444 = vmatprep.subr.bf16.mxu0 %v4037_v21  ;;  %2487 = vmatprep.subr.bf16.mxu1 %v4040_v22  ;;  %v4112_v20 = vld [vmem:[#allocation6 + $0x24c] ss:$40 sps:$4 sm:$0xff]  }
  0x9e   :  { %2445 = vmatpush1.bf16.msra.mxu0 %v4035_v23  ;;  %2488 = vmatpush1.bf16.msra.mxu1 %v4038_v24 }
  0x9f   :  { %2446 = vmatprep.subr.bf16.mxu0 %v4043_v25  ;;  %2489 = vmatprep.subr.bf16.mxu1 %v4046_v26 }
  0xa2   :  { %2447 = vmatpush1.bf16.msra.mxu0 %v4041_v27  ;;  %2490 = vmatpush1.bf16.msra.mxu1 %v4044_v28 }
  0xa3   :  { %2448 = vmatprep.subr.bf16.mxu0 %v4049_v29  ;;  %2491 = vmatprep.subr.bf16.mxu1 %v4052_v30 }
  0xa6   :  { %2449 = vmatpush1.bf16.msra.mxu0 %v4047_v31  ;;  %2492 = vmatpush1.bf16.msra.mxu1 %v4050_v32 }
  0xa7   :  { %2450 = vmatprep.subr.bf16.mxu0 %v4055_v33  ;;  %2493 = vmatprep.subr.bf16.mxu1 %v4058_v34 }
  0xaa   :  { %2451 = vmatpush1.bf16.msra.mxu0 %v4053_v35  ;;  %2494 = vmatpush1.bf16.msra.mxu1 %v4056_v36 }
  0xab   :  { %2452 = vmatprep.subr.bf16.mxu0 %v4061_v37  ;;  %2495 = vmatprep.subr.bf16.mxu1 %v4064_v38 }
  0xae   :  { %2453 = vmatpush2.bf16.msra.mxu0 %v4059_v39  ;;  %2496 = vmatpush2.bf16.msra.mxu1 %v4062_v40 }
  0xaf   :  { %2454 = vmatprep.subr.bf16.mxu0 %v4067_v41  ;;  %2497 = vmatprep.subr.bf16.mxu1 %v4070_v42 }
  0xb2   :  { %2455 = vmatpush2.bf16.msra.mxu0 %v4065_v43  ;;  %2498 = vmatpush2.bf16.msra.mxu1 %v4068_v44 }
  0xb3   :  { %2456 = vmatprep.subr.bf16.mxu0 %v4073_v45  ;;  %2499 = vmatprep.subr.bf16.mxu1 %v4076_v46 }
  0xb6   :  { %2457 = vmatpush2.bf16.msra.mxu0 %v4071_v47  ;;  %2500 = vmatpush2.bf16.msra.mxu1 %v4074_v48 }
  0xb7   :  { %2458 = vmatprep.subr.bf16.mxu0 %v4079_v49  ;;  %2501 = vmatprep.subr.bf16.mxu1 %v4082_v50  ;;  %v983_v49 = vlaneseq }
  0xba   :  { %2459 = vmatpush2.bf16.msra.mxu0 %v4077_v51  ;;  %2502 = vmatpush2.bf16.msra.mxu1 %v4080_v52 }
  0xbb   :  { %2460 = vmatprep.subr.bf16.mxu0 %v4085_v53  ;;  %2503 = vmatprep.subr.bf16.mxu1 %v4088_v54  ;;  %v4622_v54 = vshrl.u32 %v983_v49, 7 }
  0xbe   :  { %2461 = vmatpush2.bf16.msra.mxu0 %v4083_v55  ;;  %2504 = vmatpush2.bf16.msra.mxu1 %v4086_v56 }
  0xbf   :  { %2462 = vmatprep.subr.bf16.mxu0 %v4091_v59  ;;  %2505 = vmatprep.subr.bf16.mxu1 %v4094_v60 }
  0xc2   :  { %2463 = vmatpush2.bf16.msra.mxu0 %v4089_v63  ;;  %2506 = vmatpush2.bf16.msra.mxu1 %v4092_v1  ;;  %v4629_v63 = vsub.s32 0, %v4622_v54  ;;  %v1119_v1 = vsub.s32 1, %v4622_v54 }
  0xc3   :  { %2464 = vmatprep.subr.bf16.mxu0 %v4097_v4  ;;  %2507 = vmatprep.subr.bf16.mxu1 %v4100_v5  ;;  %v1111_v4 = vld [vmem:[#allocation9] ss:$4 sm:$0x3] }
  0xc4   :  { %4954 = vst [vmem:[#allocation25_spill] sm:$0xff] %v4629_v63 }
  0xc6   :  { %2465 = vmatpush2.bf16.msra.mxu0 %v4095_v8  ;;  %2508 = vmatpush2.bf16.msra.mxu1 %v4098_v9  ;;  %v4419_v9 = vmov 1983009808  }
  0xc7   :  { %2466 = vmatprep.subr.bf16.mxu0 %v4103_v13  ;;  %2509 = vmatprep.subr.bf16.mxu1 %v4106_v14  ;;  %v1116_v14 = vrot.slane %v1111_v4, %v4629_v63 }
  0xca   :  { %2467 = vmatpush2.bf16.msra.mxu0 %v4101_v12  ;;  %2510 = vmatpush2.bf16.msra.mxu1 %v4104_v0  ;;  %v981_v12 = vunpack.c.l.s4 %v4419_v9 }
  0xcb   :  { %2522 = vmatprep.subr.bf16.mxu0 %v4109_v19  ;;  %2565 = vmatprep.subr.bf16.mxu1 %v4112_v20  ;;  %v1120_v19 = vrot.slane %v1111_v4, %v1119_v1 }
  0xcd   :  { %v1122_v9 = vcombine.high %v1116_v14, %v1120_v19 }
 0x10c   :  { %v4538_v57 = vpop.f32.mrf.mxu0  ;;  %v4540_v58 = vpop.f32.mrf.mxu1 }
 0x10e   :  { %v4542_v61 = vpop.f32.mrf.mxu0  ;;  %v4544_v62 = vpop.f32.mrf.mxu1 }
 0x110   :  { %v4546_v2 = vpop.f32.mrf.mxu0  ;;  %v4548_v3 = vpop.f32.mrf.mxu1 }
 0x112   :  { %v4550_v6 = vpop.f32.mrf.mxu0  ;;  %v4552_v7 = vpop.f32.mrf.mxu1 }
 0x114   :  { %v4554_v10 = vpop.f32.mrf.mxu0  ;;  %v4556_v11 = vpop.f32.mrf.mxu1 }
 0x116   :  { %v4558_v15 = vpop.f32.mrf.mxu0  ;;  %v4560_v16 = vpop.f32.mrf.mxu1 }
 0x118   :  { %v4562_v17 = vpop.f32.mrf.mxu0  ;;  %v4564_v18 = vpop.f32.mrf.mxu1 }
 0x119   :  { %4942 = vst [vmem:[#allocation13_spill] sm:$0xff] %v4564_v18 }
 0x11a   :  { %v4566_v21 = vpop.f32.mrf.mxu0  ;;  %v4568_v22 = vpop.f32.mrf.mxu1 }
 0x11b   :  { %4943 = vst [vmem:[#allocation14_spill] sm:$0xff] %v4566_v21  ;;  %4944 = vst [vmem:[#allocation15_spill] sm:$0xff] %v4568_v22 }
 0x11c   :  { %v4570_v23 = vpop.f32.mrf.mxu0  ;;  %v4572_v24 = vpop.f32.mrf.mxu1 }
 0x11e   :  { %v4574_v25 = vpop.f32.mrf.mxu0  ;;  %v4576_v26 = vpop.f32.mrf.mxu1 }
 0x120   :  { %v4578_v27 = vpop.f32.mrf.mxu0  ;;  %v4580_v28 = vpop.f32.mrf.mxu1 }
 0x122   :  { %v4582_v29 = vpop.f32.mrf.mxu0  ;;  %v4584_v30 = vpop.f32.mrf.mxu1 }
 0x124   :  { %v4586_v31 = vpop.f32.mrf.mxu0  ;;  %v4588_v32 = vpop.f32.mrf.mxu1 }
 0x126   :  { %v4590_v33 = vpop.f32.mrf.mxu0  ;;  %v4592_v34 = vpop.f32.mrf.mxu1 }
 0x128   :  { %v4594_v35 = vpop.f32.mrf.mxu0  ;;  %v4596_v36 = vpop.f32.mrf.mxu1 }
 0x129   :  { %4945 = vst [vmem:[#allocation16_spill] sm:$0xff] %v4596_v36 }
 0x12a   :  { %v4598_v37 = vpop.f32.mrf.mxu0  ;;  %v4600_v38 = vpop.f32.mrf.mxu1 }
 0x12b   :  { %4946 = vst [vmem:[#allocation17_spill] sm:$0xff] %v4598_v37  ;;  %4947 = vst [vmem:[#allocation18_spill] sm:$0xff] %v4600_v38 }
 0x12c   :  { %v535_v39 = vpop.f32.mrf.mxu0  ;;  %v588_v40 = vpop.f32.mrf.mxu1 }
 0x12e   :  { %v537_v41 = vpop.f32.mrf.mxu0  ;;  %v590_v42 = vpop.f32.mrf.mxu1 }
 0x130   :  { %v4602_v43 = vpop.f32.mrf.mxu0  ;;  %v4604_v44 = vpop.f32.mrf.mxu1 }
 0x132   :  { %v4606_v45 = vpop.f32.mrf.mxu0  ;;  %v4608_v46 = vpop.f32.mrf.mxu1 }
 0x134   :  { %v4610_v47 = vpop.f32.mrf.mxu0  ;;  %v4612_v48 = vpop.f32.mrf.mxu1 }
 0x136   :  { %v4614_v50 = vpop.f32.mrf.mxu0  ;;  %v4616_v51 = vpop.f32.mrf.mxu1 }
 0x137   :  { %4948 = vst [vmem:[#allocation19_spill] sm:$0xff] %v4614_v50  ;;  %4949 = vst [vmem:[#allocation20_spill] sm:$0xff] %v4616_v51 }
 0x138   :  { %v4618_v52 = vpop.f32.mrf.mxu0  ;;  %v4620_v53 = vpop.f32.mrf.mxu1 }
 0x139   :  { %4950 = vst [vmem:[#allocation21_spill] sm:$0xff] %v4618_v52  ;;  %4951 = vst [vmem:[#allocation22_spill] sm:$0xff] %v4620_v53  ;;  %v1121_v52 = vcombine.low %v1116_v14, %v1120_v19  ;;  %v361_v14 = vadd.f32 %v4574_v25, %v4542_v61 }
 0x13a   :  { %v4624_v55 = vpop.f32.mrf.mxu0  ;;  %v4626_v56 = vpop.f32.mrf.mxu1 }
 0x13b   :  { %4952 = vst [vmem:[#allocation23_spill] sm:$0xff] %v4624_v55  ;;  %4953 = vst [vmem:[#allocation24_spill] sm:$0xff] %v4626_v56  ;;  %v982_v56 = vunpack.c.0.s8 %v981_v12 }
 0x13c   :  { %v693_v59 = vpop.f32.mrf.mxu0  ;;  %v746_v60 = vpop.f32.mrf.mxu1 }
 0x13d   :  { %v4640_v37 = vsub.s32 %v982_v56, %v4622_v54  ;;  %v412_v56 = vadd.f32 %v4572_v24, %v4540_v58  ;;  %v363_v58 = vadd.f32 %v4578_v27, %v4546_v2  ;;  %v418_v2 = vadd.f32 %v4584_v30, %v4552_v7 }
 0x13e   :  { %v695_v5 = vpop.f32.mrf.mxu0  ;;  %v748_v8 = vpop.f32.mrf.mxu1 }
 0x13f   :  { %v4647_v1 = vrot.slane %v1121_v52, %v4640_v37  ;;  %v4654_v63 = vrot.slane %v1122_v9, %v4640_v37  ;;  %v414_v52 = vadd.f32 %v4576_v26, %v4544_v62  ;;  %v696_v24 = vadd.f32 %v695_v5, %v537_v41 }
 0x140   :  { %v697_v13 = vpop.f32.mrf.mxu0  ;;  %v750_v0 = vpop.f32.mrf.mxu1  ;;  %v749_v61 = vadd.f32 %v748_v8, %v590_v42 }
 0x141   :  { %v1139_v9 = vrot.slane %v4647_v1, 1  ;;  %v4673_v62 = vcombine.high %v4654_v63, %v4654_v63  ;;  %v698_v27 = vadd.f32 %v697_v13, %v4602_v43  ;;  %v369_v43 = vadd.f32 %v4586_v31, %v4554_v10 }
 0x142   :  { %v699_v20 = vpop.f32.mrf.mxu0  ;;  %v752_v49 = vpop.f32.mrf.mxu1 }
 0x144   :  { %v703_v55 = vpop.f32.mrf.mxu0  ;;  %v4633_v53 = vpop.f32.mrf.mxu1 }
 0x146   :  { %v4635_v38 = vpop.f32.mrf.mxu0  ;;  %v4637_v22 = vpop.f32.mrf.mxu1 }
 0x147   :  { %4955 = vst [vmem:[#allocation26_spill] sm:$0xff] %v4635_v38  ;;  %4956 = vst [vmem:[#allocation27_spill] sm:$0xff] %v4637_v22  ;;  %v359_v22 = vadd.f32 %v4570_v23, %v4538_v57 }
 0x148   :  { %v4642_v21 = vpop.f32.mrf.mxu0  ;;  %v4644_v51 = vpop.f32.mrf.mxu1 }
 0x149   :  { %4957 = vst [vmem:[#allocation28_spill] sm:$0xff] %v4642_v21  ;;  %4958 = vst [vmem:[#allocation29_spill] sm:$0xff] %v4644_v51  ;;  %v747_v21 = vadd.f32 %v746_v60, %v588_v40 }
 0x14a   :  { %v4649_v4 = vpop.f32.mrf.mxu0  ;;  %v4651_v12 = vpop.f32.mrf.mxu1 }
 0x14b   :  { %4959 = vst [vmem:[#allocation30_spill] sm:$0xff] %v4649_v4  ;;  %4960 = vst [vmem:[#allocation31_spill] sm:$0xff] %v4651_v12  ;;  %v4666_v12 = vcombine.high %v4647_v1, %v4647_v1  ;;  %v694_v4 = vadd.f32 %v693_v59, %v535_v39  ;;  %v416_v39 = vadd.f32 %v4580_v28, %v4548_v3 }
 0x14c   :  { %v858_v19 = vpop.f32.mrf.mxu0  ;;  %v911_v51 = vpop.f32.mrf.mxu1  ;;  %v753_v3 = vadd.f32 %v752_v49, %v4608_v46  ;;  %v757_v49 = vadd.f32 %v4633_v53, %v4612_v48 }
 0x14d   :  { %v930_v57 = vadd.f32 %v858_v19, %v359_v22  ;;  %v932_v23 = vadd.f32 %v911_v51, %v412_v56  ;;  %v365_v22 = vadd.f32 %v4582_v29, %v4550_v6 }
 0x14e   :  { %v860_v25 = vpop.f32.mrf.mxu0  ;;  %v913_v38 = vpop.f32.mrf.mxu1 }
 0x14f   :  { %v946_v26 = vadd.f32 %v930_v57, %v694_v4  ;;  %v948_v50 = vadd.f32 %v932_v23, %v747_v21  ;;  %v931_v36 = vadd.f32 %v860_v25, %v361_v14  ;;  %v933_v18 = vadd.f32 %v913_v38, %v414_v52 }
 0x150   :  { %v862_v40 = vpop.f32.mrf.mxu0  ;;  %v915_v41 = vpop.f32.mrf.mxu1  ;;  %v751_v21 = vadd.f32 %v750_v0, %v4604_v44  ;;  %v700_v38 = vadd.f32 %v699_v20, %v4606_v45 }
 0x151   :  { %v962_v42 = vmax.f32 %v946_v26, %v948_v50  ;;  %v947_v51 = vadd.f32 %v931_v36, %v696_v24  ;;  %v949_v59 = vadd.f32 %v933_v18, %v749_v61  ;;  %v934_v60 = vadd.f32 %v862_v40, %v363_v58 }
 0x152   :  { %v936_v28 = vadd.f32 %v915_v41, %v416_v39  ;;  %v864_v5 = vpop.f32.mrf.mxu0  ;;  %v917_v6 = vpop.f32.mrf.mxu1  ;;  %v422_v18 = vadd.f32 %v4588_v32, %v4556_v11  ;;  %v704_v36 = vadd.f32 %v703_v55, %v4610_v47  ;;  %v1140_v11 = vrot.slane %v4666_v12, 1 }
 0x153   :  { %v963_v29 = vmax.f32 %v947_v51, %v949_v59  ;;  %v950_v8 = vadd.f32 %v934_v60, %v698_v27  ;;  %v935_v7 = vadd.f32 %v864_v5, %v365_v22  ;;  %v937_v30 = vadd.f32 %v917_v6, %v418_v2 }
 0x154   :  { %v952_v44 = vadd.f32 %v936_v28, %v751_v21  ;;  %v868_v50 = vpop.f32.mrf.mxu0  ;;  %v921_v45 = vpop.f32.mrf.mxu1  ;;  %v4696_v47 = vsub.s32 2, %v4622_v54  ;;  %v1141_v55 = vrot.slane %v4654_v63, 1  ;;  %v1142_v61 = vrot.slane %v4673_v62, 1 }
 0x155   :  { %v978_v13 = vcombine.low %v962_v42, %v963_v29  ;;  %v979_v46 = vcombine.high %v962_v42, %v963_v29  ;;  %v951_v0 = vadd.f32 %v935_v7, %v700_v38  ;;  %v953_v20 = vadd.f32 %v937_v30, %v753_v3  ;;  %v4961_v38 = vld [vmem:[#allocation13_spill] sm:$0xff]  ;;  %v4962_v3 = vld [vmem:[#allocation16_spill] sm:$0xff]  ;;  %v4963_v29 = vld [vmem:[#allocation19_spill] sm:$0xff] }
 0x156   :  { %v964_v4 = vmax.f32 %v950_v8, %v952_v44  ;;  %v938_v56 = vadd.f32 %v868_v50, %v369_v43  ;;  %v940_v14 = vadd.f32 %v921_v45, %v422_v18  ;;  %v371_v54 = vadd.f32 %v4590_v33, %v4558_v15  ;;  %v870_v21 = vpop.f32.mrf.mxu0  ;;  %v923_v6 = vpop.f32.mrf.mxu1  ;;  %v4964_v8 = vld [vmem:[#allocation26_spill] sm:$0xff]  ;;  %v4965_v30 = vld [vmem:[#allocation20_spill] sm:$0xff]  ;;  %v4966_v43 = vld [vmem:[#allocation27_spill] sm:$0xff] }
 0x157   :  { %v986_v10 = vrot.slane %v978_v13, %v4640_v37  ;;  %v993_v31 = vrot.slane %v979_v46, %v4640_v37  ;;  %v965_v32 = vmax.f32 %v951_v0, %v953_v20  ;;  %v424_v27 = vadd.f32 %v4592_v34, %v4560_v16  ;;  %v4967_v13 = vld [vmem:[#allocation25_spill] sm:$0xff] }
 0x158   :  { %v954_v52 = vadd.f32 %v938_v56, %v704_v36  ;;  %v956_v19 = vadd.f32 %v940_v14, %v757_v49  ;;  %v4708_v40 = vadd.f32 %v4594_v35, %v4562_v17  ;;  %v4715_v28 = vadd.f32 %v4962_v3, %v4961_v38 }
 0x159   :  { %v994_v57 = vcombine.high %v986_v10, %v986_v10  ;;  %v995_v23 = vcombine.high %v993_v31, %v993_v31  ;;  %v3532_v48 = vrot.slane %v986_v10, 9  ;;  %v3534_v53 = vrot.slane %v993_v31, 9 }
 0x15a   :  { %v996_v58 = vcombine.low %v964_v4, %v965_v32  ;;  %v997_v24 = vcombine.high %v964_v4, %v965_v32  ;;  %v4700_v25 = vmax.f32 %v954_v52, %v956_v19  ;;  %v706_v7 = vadd.f32 %v4964_v8, %v4963_v29 }
 0x15b   :  { %v3533_v26 = vrot.slane %v994_v57, 9  ;;  %v3535_v39 = vrot.slane %v995_v23, 9  ;;  %v1097_v22 = vmax.f32 %v986_v10, %v3532_v48  ;;  %v1099_v2 = vmax.f32 %v993_v31, %v3534_v53 }
 0x15c   :  { %v1004_v41 = vrot.slane %v996_v58, %v4640_v37  ;;  %v1011_v15 = vrot.slane %v997_v24, %v4640_v37  ;;  %v759_v18 = vadd.f32 %v4966_v43, %v4965_v30  ;;  %v939_v44 = vadd.f32 %v870_v21, %v371_v54  ;;  %v872_v43 = vpop.f32.mrf.mxu0 }
 0x15d   :  { %v1098_v42 = vmax.f32 %v994_v57, %v3533_v26  ;;  %v1100_v51 = vmax.f32 %v995_v23, %v3535_v39  ;;  %v1151_v59 = vadd.f32 %v4647_v1, %v1097_v22  ;;  %v1153_v60 = vadd.f32 %v4666_v12, %v1099_v2 }
 0x15e   :  { %v1012_v16 = vcombine.high %v1004_v41, %v1004_v41  ;;  %v3536_v33 = vrot.slane %v1004_v41, 9  ;;  %v3538_v4 = vrot.slane %v1011_v15, 9  ;;  %v941_v56 = vadd.f32 %v923_v6, %v424_v27 }
 0x15f   :  { %v1152_v17 = vadd.f32 %v1139_v9, %v1098_v42  ;;  %v1154_v34 = vadd.f32 %v1140_v11, %v1100_v51  ;;  %v1165_v35 = vmax.f32 %v1151_v59, 0.0  ;;  %v1167_v5 = vmax.f32 %v1153_v60, 0.0  ;;  %v4968_v59 = vld [vmem:[#allocation14_spill] sm:$0xff]  ;;  %v4969_v60 = vld [vmem:[#allocation17_spill] sm:$0xff] }
 0x160   :  { %v3537_v36 = vrot.slane %v1012_v16, 9  ;;  %v1013_v31 = vcombine.high %v1011_v15, %v1011_v15  ;;  %v1101_v32 = vmax.f32 %v1004_v41, %v3536_v33  ;;  %v1103_v22 = vmax.f32 %v1011_v15, %v3538_v4 }
 0x161   :  { %v1166_v50 = vmax.f32 %v1152_v17, 0.0  ;;  %v1168_v45 = vmax.f32 %v1154_v34, 0.0  ;;  %v1196_v46 = vrot.slane %v1165_v35, %v4967_v13  ;;  %v1200_v0 = vrot.slane %v1165_v35, %v4696_v47 }
 0x162   :  { %v1212_v20 = vrot.slane %v1167_v5, %v4967_v13  ;;  %v1216_v49 = vrot.slane %v1167_v5, %v4696_v47  ;;  %v1102_v23 = vmax.f32 %v1012_v16, %v3537_v36  ;;  %v955_v2 = vadd.f32 %v939_v44, %v706_v7  ;;  %v4971_v36 = vld [vmem:[#allocation18_spill] sm:$0xff] }
 0x163   :  { %v1204_v14 = vrot.slane %v1166_v50, %v4967_v13  ;;  %v1208_v10 = vrot.slane %v1166_v50, %v4696_v47  ;;  %v1224_v52 = vrot.slane %v1168_v45, %v4696_v47  ;;  %v1333_v48 = vpack.c.bf16 %v1196_v46, %v1196_v46 }
 0x164   :  { %v1337_v19 = vpack.c.bf16 %v1212_v20, %v1212_v20  ;;  %v1338_v57 = vpack.c.bf16 %v1216_v49, %v1216_v49  ;;  %v1334_v53 = vpack.c.bf16 %v1200_v0, %v1200_v0  ;;  %v3539_v42 = vrot.slane %v1013_v31, 9  ;;  %v4972_v20 = vld [vmem:[#allocation21_spill] sm:$0xff]  ;;  %v4973_v49 = vld [vmem:[#allocation28_spill] sm:$0xff] }
 0x165   :  { %v1335_v58 = vpack.c.bf16 %v1204_v14, %v1204_v14  ;;  %v1336_v24 = vpack.c.bf16 %v1208_v10, %v1208_v10  ;;  %v957_v51 = vadd.f32 %v941_v56, %v759_v18  ;;  %v4735_v41 = vadd.f32 %v4969_v60, %v4968_v59  ;;  %v4970_v18 = vld [vmem:[#allocation15_spill] sm:$0xff] }
 0x166   :  { %v1553_v26 = vunpack.c.l.b16 %v1337_v19  ;;  %v1554_v39 = vunpack.c.l.b16 %v1338_v57  ;;  %v1340_v21 = vpack.c.bf16 %v1224_v52, %v1224_v52  ;;  %v1155_v38 = vadd.f32 %v4654_v63, %v1101_v32  ;;  %v4974_v57 = vld [vmem:[#allocation22_spill] sm:$0xff] }
 0x167   :  { %v1551_v54 = vunpack.c.l.b16 %v1335_v58  ;;  %v1552_v27 = vunpack.c.l.b16 %v1336_v24  ;;  %v1156_v3 = vadd.f32 %v1141_v55, %v1102_v23  ;;  %v1549_v16 = vunpack.c.l.b16 %v1333_v48  ;;  %v4975_v23 = vld [vmem:[#allocation29_spill] sm:$0xff]  ;;  %v925_v24 = vpop.f32.mrf.mxu1 }
 0x168   :  { %v1550_v33 = vunpack.c.l.b16 %v1334_v53  ;;  %v1580_v15 = vrot.slane %v1553_v26, 6  ;;  %v1600_v35 = vrot.slane %v1554_v39, 6  ;;  %v1157_v5 = vadd.f32 %v4673_v62, %v1103_v22  ;;  %v4976_v22 = vld [vmem:[#allocation23_spill] sm:$0xff] }
 0x169   :  { %v1577_v17 = vrot.slane %v1551_v54, 7  ;;  %v1598_v34 = vrot.slane %v1552_v27, 7  ;;  %v1169_v6 = vmax.f32 %v1155_v38, 0.0  ;;  %v1104_v7 = vmax.f32 %v1013_v31, %v3539_v42  ;;  %v4978_v27 = vld [vmem:[#allocation24_spill] sm:$0xff]  ;;  %v4979_v62 = vld [vmem:[#allocation31_spill] sm:$0xff] }
 0x16a   :  { %v967_v30 = vmax.f32 %v955_v2, %v957_v51  ;;  %v428_v44 = vadd.f32 %v4971_v36, %v4970_v18  ;;  %v1170_v0 = vmax.f32 %v1156_v3, 0.0  ;;  %v708_v4 = vadd.f32 %v4973_v49, %v4972_v20  ;;  %v4977_v2 = vld [vmem:[#allocation30_spill] sm:$0xff] }
 0x16b   :  { %v1579_v29 = vsel %vm1578_vm5, %v1577_v17, %v1549_v16  ;;  %v1599_v8 = vsel %vm1578_vm5, %v1598_v34, %v1550_v33  ;;  %v1220_v56 = vrot.slane %v1168_v45, %v4967_v13  ;;  %v1171_v14 = vmax.f32 %v1157_v5, 0.0  ;;  %v874_v34 = vpop.f32.mrf.mxu0 }
 0x16c   :  { %v4746_v50 = vsel %vm1581_vm6, %v1580_v15, %v1579_v29  ;;  %v1601_v46 = vsel %vm1581_vm6, %v1600_v35, %v1599_v8  ;;  %v1232_v10 = vrot.slane %v1169_v6, %v4696_v47  ;;  %v1556_v31 = vunpack.c.l.b16 %v1340_v21  ;;  %v927_v15 = vpop.f32.mrf.mxu1 }
 0x16d   :  { %v1014_v32 = vcombine.low %v4700_v25, %v967_v30  ;;  %v1015_v52 = vcombine.high %v4700_v25, %v967_v30  ;;  %v942_v19 = vadd.f32 %v872_v43, %v4708_v40  ;;  %v761_v48 = vadd.f32 %v4975_v23, %v4974_v57 }
 0x16e   :  { %v4760_v53 = vadd.f32 %v1142_v61, %v1104_v7  ;;  %v1228_v45 = vrot.slane %v1169_v6, %v4967_v13  ;;  %v1342_v58 = vpack.c.bf16 %v1232_v10, %v1232_v10  ;;  %v1236_v26 = vrot.slane %v1170_v0, %v4967_v13 }
 0x16f   :  { %v1240_v39 = vrot.slane %v1170_v0, %v4696_v47  ;;  %v1022_v25 = vrot.slane %v1014_v32, %v4640_v37  ;;  %v1029_v40 = vrot.slane %v1015_v52, %v4640_v37  ;;  %v710_v54 = vadd.f32 %v4977_v2, %v4976_v22 }
 0x170   :  { %v763_v61 = vadd.f32 %v4979_v62, %v4978_v27  ;;  %v1339_v42 = vpack.c.bf16 %v1220_v56, %v1220_v56  ;;  %v1244_v51 = vrot.slane %v1171_v14, %v4967_v13  ;;  %v1602_v59 = vrot.slane %v1556_v31, 5 }
 0x171   :  { %v1030_v60 = vcombine.high %v1022_v25, %v1022_v25  ;;  %v1031_v21 = vcombine.high %v1029_v40, %v1029_v40  ;;  %v4772_v38 = vadd.f32 %v942_v19, %v708_v4  ;;  %v1172_v3 = vmax.f32 %v4760_v53, 0.0 }
 0x172   :  { %v1248_v16 = vrot.slane %v1171_v14, %v4696_v47  ;;  %v1341_v33 = vpack.c.bf16 %v1228_v45, %v1228_v45  ;;  %v1558_v17 = vunpack.c.l.b16 %v1342_v58  ;;  %v1343_v35 = vpack.c.bf16 %v1236_v26, %v1236_v26 }
 0x173   :  { %v1344_v5 = vpack.c.bf16 %v1240_v39, %v1240_v39  ;;  %v3540_v6 = vrot.slane %v1022_v25, 9  ;;  %v3541_v29 = vrot.slane %v1030_v60, 9  ;;  %v1345_v8 = vpack.c.bf16 %v1244_v51, %v1244_v51 }
 0x174   :  { %v3542_v7 = vrot.slane %v1029_v40, 9  ;;  %v3543_v30 = vrot.slane %v1031_v21, 9  ;;  %v944_v43 = vadd.f32 %v925_v24, %v4715_v28  ;;  %v943_v0 = vadd.f32 %v874_v34, %v4735_v41 }
 0x175   :  { %v1105_v18 = vmax.f32 %v1022_v25, %v3540_v6  ;;  %v1106_v36 = vmax.f32 %v1030_v60, %v3541_v29  ;;  %v945_v20 = vadd.f32 %v927_v15, %v428_v44  ;;  %v1604_v49 = vrot.slane %v1558_v17, 4 }
 0x176   :  { %v1107_v4 = vmax.f32 %v1029_v40, %v3542_v7  ;;  %v1108_v56 = vmax.f32 %v1031_v21, %v3543_v30  ;;  %v960_v14 = vadd.f32 %v944_v43, %v761_v48  ;;  %v1346_v10 = vpack.c.bf16 %v1248_v16, %v1248_v16 }
 0x177   :  { %v1159_v31 = vadd.f32 %v4647_v1, %v1105_v18  ;;  %v1160_v32 = vadd.f32 %v1139_v9, %v1106_v36  ;;  %v1256_v52 = vrot.slane %v1172_v3, %v4696_v47  ;;  %v1560_v19 = vunpack.c.l.b16 %v1344_v5 }
 0x178   :  { %v1161_v28 = vadd.f32 %v4666_v12, %v1107_v4  ;;  %v968_v57 = vmax.f32 %v4772_v38, %v960_v14  ;;  %v1603_v41 = vsel %vm1584_vm7, %v1602_v59, %v1601_v46  ;;  %v1162_v44 = vadd.f32 %v1140_v11, %v1108_v56 }
 0x179   :  { %v1174_v23 = vmax.f32 %v1160_v32, 0.0  ;;  %v959_v48 = vadd.f32 %v943_v0, %v710_v54  ;;  %v961_v53 = vadd.f32 %v945_v20, %v763_v61  ;;  %v1555_v45 = vunpack.c.l.b16 %v1339_v42 }
 0x17a   :  { %v1557_v58 = vunpack.c.l.b16 %v1341_v33  ;;  %v1173_v24 = vmax.f32 %v1159_v31, 0.0  ;;  %v1605_v1 = vsel %vm1587_vm8, %v1604_v49, %v1603_v41  ;;  %v1559_v9 = vunpack.c.l.b16 %v1343_v35 }
 0x17b   :  { %v1268_v26 = vrot.slane %v1174_v23, %v4967_v13  ;;  %v1272_v39 = vrot.slane %v1174_v23, %v4696_v47  ;;  %v1348_v25 = vpack.c.bf16 %v1256_v52, %v1256_v52  ;;  %v1561_v40 = vunpack.c.l.b16 %v1345_v8 }
 0x17c   :  { %v1175_v22 = vmax.f32 %v1161_v28, 0.0  ;;  %v1562_v12 = vunpack.c.l.b16 %v1346_v10  ;;  %v1606_v11 = vrot.slane %v1560_v19, 3  ;;  %v1176_v46 = vmax.f32 %v1162_v44, 0.0 }
 0x17d   :  { %v969_v2 = vmax.f32 %v959_v48, %v961_v53  ;;  %v1583_v54 = vrot.slane %v1555_v45, 5  ;;  %v1260_v27 = vrot.slane %v1173_v24, %v4967_v13  ;;  %v1264_v62 = vrot.slane %v1173_v24, %v4696_v47 }
 0x17e   :  { %v1351_v61 = vpack.c.bf16 %v1268_v26, %v1268_v26  ;;  %v1586_v42 = vrot.slane %v1557_v58, 4  ;;  %v1589_v51 = vrot.slane %v1559_v9, 3  ;;  %v1352_v59 = vpack.c.bf16 %v1272_v39, %v1272_v39 }
 0x17f   :  { %v1564_v60 = vunpack.c.l.b16 %v1348_v25  ;;  %v1592_v21 = vrot.slane %v1561_v40, 2  ;;  %v1276_v38 = vrot.slane %v1175_v22, %v4967_v13  ;;  %v1280_v16 = vrot.slane %v1175_v22, %v4696_v47 }
 0x180   :  { %v1252_v33 = vrot.slane %v1172_v3, %v4967_v13  ;;  %v1608_v17 = vrot.slane %v1562_v12, 2  ;;  %v1284_v34 = vrot.slane %v1176_v46, %v4967_v13  ;;  %v1032_v15 = vcombine.low %v968_v57, %v969_v2 }
 0x181   :  { %v1607_v35 = vsel %vm1590_vm9, %v1606_v11, %v1605_v1  ;;  %v1288_v5 = vrot.slane %v1176_v46, %v4696_v47  ;;  %v1349_v6 = vpack.c.bf16 %v1260_v27, %v1260_v27  ;;  %v1350_v29 = vpack.c.bf16 %v1264_v62, %v1264_v62 }
 0x182   :  { %v1567_v8 = vunpack.c.l.b16 %v1351_v61  ;;  %v1568_v7 = vunpack.c.l.b16 %v1352_v59  ;;  %v1039_v30 = vrot.slane %v1032_v15, %v4640_v37  ;;  %v1609_v43 = vsel %vm1593_vm10, %v1608_v17, %v1607_v35 }
 0x183   :  { %v1610_v18 = vrot.slane %v1564_v60, 1  ;;  %v1353_v36 = vpack.c.bf16 %v1276_v38, %v1276_v38  ;;  %v1354_v0 = vpack.c.bf16 %v1280_v16, %v1280_v16  ;;  %v1347_v3 = vpack.c.bf16 %v1252_v33, %v1252_v33 }
 0x184   :  { %v1585_v20 = vsel %vm1584_vm7, %v1583_v54, %v4746_v50  ;;  %v1355_v49 = vpack.c.bf16 %v1284_v34, %v1284_v34  ;;  %v1040_v4 = vcombine.high %v1039_v30, %v1039_v30  ;;  %v3544_v56 = vrot.slane %v1039_v30, 9 }
 0x185   :  { %v1611_v14 = vsel %vm1596_vm11, %v1610_v18, %v1609_v43  ;;  %v1356_v10 = vpack.c.bf16 %v1288_v5, %v1288_v5  ;;  %v1612_v31 = vrot.slane %v1567_v8, 7  ;;  %v1563_v32 = vunpack.c.l.b16 %v1347_v3  ;;  %v4107_v18 = vld [vmem:[#allocation6 + $0x240] ss:$40 sps:$4 sm:$0xff]   ;;  %v4115_v3 = vld [vmem:[#allocation6 + $0x1f4] ss:$40 sps:$4 sm:$0xff]  }
 0x186   :  { %v1588_v52 = vsel %vm1587_vm8, %v1586_v42, %v1585_v20  ;;  %v1622_v19 = vrot.slane %v1568_v7, 7  ;;  %v3545_v28 = vrot.slane %v1040_v4, 9  ;;  %v1109_v57 = vmax.f32 %v1039_v30, %v3544_v56  ;;  %v4118_v20 = vld [vmem:[#allocation6 + $0x1fc] ss:$40 sps:$4 sm:$0xff]  }
 0x187   :  { %v1591_v41 = vsel %vm1590_vm9, %v1589_v51, %v1588_v52  ;;  %v1569_v44 = vunpack.c.l.b16 %v1353_v36  ;;  %v1570_v23 = vunpack.c.l.b16 %v1354_v0  ;;  %v1595_v50 = vrot.slane %v1563_v32, 1  ;;  %v4110_v36 = vld [vmem:[#allocation6 + $0x248] ss:$40 sps:$4 sm:$0xff]   ;;  %v4121_v56 = vld [vmem:[#allocation6 + $0x1a4] ss:$40 sps:$4 sm:$0xff]  }
 0x188   :  { %v1594_v48 = vsel %vm1593_vm10, %v1592_v21, %v1591_v41  ;;  %v1565_v53 = vunpack.c.l.b16 %v1349_v6  ;;  %v1566_v45 = vunpack.c.l.b16 %v1350_v29  ;;  %v1110_v58 = vmax.f32 %v1040_v4, %v3545_v28  ;;  %v4116_v4 = vld [vmem:[#allocation6 + $0x1f8] ss:$40 sps:$4 sm:$0xff]   ;;  %v4127_v32 = vld [vmem:[#allocation6 + $0x154] ss:$40 sps:$4 sm:$0xff]  }
 0x189   :  { %v1163_v24 = vadd.f32 %v4654_v63, %v1109_v57  ;;  %v1597_v1 = vsel %vm1596_vm11, %v1595_v50, %v1594_v48  ;;  %v1571_v40 = vunpack.c.l.b16 %v1355_v49  ;;  %v1572_v22 = vunpack.c.l.b16 %v1356_v10  ;;  %v4113_v49 = vld [vmem:[#allocation6 + $0x1f0] ss:$40 sps:$4 sm:$0xff]   ;;  %v4119_v10 = vld [vmem:[#allocation6 + $0x1a0] ss:$40 sps:$4 sm:$0xff]   ;;  %v4130_v52 = vld [vmem:[#allocation6 + $0x15c] ss:$40 sps:$4 sm:$0xff]  }
 0x18a   :  { %v1164_v9 = vadd.f32 %v1141_v55, %v1110_v58  ;;  %v1623_v39 = vsel %vm1578_vm5, %v1622_v19, %v1566_v45  ;;  %v1613_v25 = vsel %vm1578_vm5, %v1612_v31, %v1565_v53  ;;  %v1614_v12 = vrot.slane %v1569_v44, 6  ;;  %v4122_v31 = vld [vmem:[#allocation6 + $0x1a8] ss:$40 sps:$4 sm:$0xff]   ;;  %v4128_v28 = vld [vmem:[#allocation6 + $0x158] ss:$40 sps:$4 sm:$0xff]  }
 0x18b   :  { %v1177_v26 = vmax.f32 %v1163_v24, 0.0  ;;  %v1624_v11 = vrot.slane %v1570_v23, 6  ;;  %v1616_v51 = vrot.slane %v1571_v40, 5  ;;  %v1626_v59 = vrot.slane %v1572_v22, 5  ;;  %v4125_v19 = vld [vmem:[#allocation6 + $0x150] ss:$40 sps:$4 sm:$0xff]  }
 0x18c   :  { %v1178_v46 = vmax.f32 %v1164_v9, 0.0  ;;  %v1615_v62 = vsel %vm1581_vm6, %v1614_v12, %v1613_v25  ;;  %v4133_v57 = vld [vmem:[#allocation6 + $0x104] ss:$40 sps:$4 sm:$0xff]   ;;  %v4131_v44 = vld [vmem:[#allocation6 + $0x100] ss:$40 sps:$4 sm:$0xff]  }
 0x18d   :  { %v1292_v2 = vrot.slane %v1177_v26, %v4967_v13  ;;  %v1296_v54 = vrot.slane %v1177_v26, %v4696_v47  ;;  %v1625_v27 = vsel %vm1581_vm6, %v1624_v11, %v1623_v39  ;;  %v1617_v17 = vsel %vm1584_vm7, %v1616_v51, %v1615_v62  ;;  %v4136_v41 = vld [vmem:[#allocation6 + $0x10c] ss:$40 sps:$4 sm:$0xff]   ;;  %v4134_v23 = vld [vmem:[#allocation6 + $0x108] ss:$40 sps:$4 sm:$0xff]   ;;  %v4142_v50 = vld [vmem:[#allocation6 + $0xbc] ss:$40 sps:$4 sm:$0xff]  }
 0x18e   :  { %v1304_v61 = vrot.slane %v1178_v46, %v4696_v47  ;;  %v1300_v42 = vrot.slane %v1178_v46, %v4967_v13  ;;  %v1627_v33 = vsel %vm1584_vm7, %v1626_v59, %v1625_v27  ;;  %v4139_v48 = vld [vmem:[#allocation6 + $0xb4] ss:$40 sps:$4 sm:$0xff]   ;;  %v4137_v53 = vld [vmem:[#allocation6 + $0xb0] ss:$40 sps:$4 sm:$0xff]   ;;  %v4145_v58 = vld [vmem:[#allocation6 + $0x64] ss:$40 sps:$4 sm:$0xff]  }
 0x18f   :  { %v1357_v63 = vpack.c.bf16 %v1292_v2, %v1292_v2  ;;  %v1358_v55 = vpack.c.bf16 %v1296_v54, %v1296_v54  ;;  %v4140_v45 = vld [vmem:[#allocation6 + $0xb8] ss:$40 sps:$4 sm:$0xff]   ;;  %v4148_v24 = vld [vmem:[#allocation6 + $0x6c] ss:$40 sps:$4 sm:$0xff]   ;;  %v4146_v9 = vld [vmem:[#allocation6 + $0x68] ss:$40 sps:$4 sm:$0xff]  }
 0x190   :  { %v1360_v38 = vpack.c.bf16 %v1304_v61, %v1304_v61  ;;  %v1359_v16 = vpack.c.bf16 %v1300_v42, %v1300_v42  ;;  %v4151_v26 = vld [vmem:[#allocation6 + $0x14] ss:$40 sps:$4 sm:$0xff]   ;;  %v4149_v25 = vld [vmem:[#allocation6 + $0x10] ss:$40 sps:$4 sm:$0xff]   ;;  %v4157_v22 = vld [vmem:[#allocation6 + $0x4c4] ss:$40 sps:$4 sm:$0xff]  }
 0x191   :  { %v1573_v60 = vunpack.c.l.b16 %v1357_v63  ;;  %v1574_v21 = vunpack.c.l.b16 %v1358_v55  ;;  %v4154_v39 = vld [vmem:[#allocation6 + $0x1c] ss:$40 sps:$4 sm:$0xff]   ;;  %v4152_v40 = vld [vmem:[#allocation6 + $0x18] ss:$40 sps:$4 sm:$0xff]   ;;  %v4160_v12 = vld [vmem:[#allocation6 + $0x4cc] ss:$40 sps:$4 sm:$0xff]  }
 0x192   :  { %v1576_v35 = vunpack.c.l.b16 %v1360_v38  ;;  %v1575_v5 = vunpack.c.l.b16 %v1359_v16  ;;  %v4155_v11 = vld [vmem:[#allocation6 + $0x4c0] ss:$40 sps:$4 sm:$0xff]   ;;  %v4163_v2 = vld [vmem:[#allocation6 + $0x474] ss:$40 sps:$4 sm:$0xff]   ;;  %v4161_v27 = vld [vmem:[#allocation6 + $0x470] ss:$40 sps:$4 sm:$0xff]  }
 0x193   :  { %v1618_v34 = vrot.slane %v1573_v60, 4  ;;  %v1628_v15 = vrot.slane %v1574_v21, 4  ;;  %v4158_v46 = vld [vmem:[#allocation6 + $0x4c8] ss:$40 sps:$4 sm:$0xff]   ;;  %v4166_v54 = vld [vmem:[#allocation6 + $0x47c] ss:$40 sps:$4 sm:$0xff]  }
 0x194   :  { %v1630_v29 = vrot.slane %v1576_v35, 3  ;;  %v1620_v8 = vrot.slane %v1575_v5, 3  ;;  %v4164_v62 = vld [vmem:[#allocation6 + $0x478] ss:$40 sps:$4 sm:$0xff]   ;;  %v4169_v63 = vld [vmem:[#allocation6 + $0x424] ss:$40 sps:$4 sm:$0xff]  }
 0x195   :  { %v1629_v6 = vsel %vm1587_vm8, %v1628_v15, %v1627_v33  ;;  %v1619_v47 = vsel %vm1587_vm8, %v1618_v34, %v1617_v17  ;;  %v4172_v55 = vld [vmem:[#allocation6 + $0x42c] ss:$40 sps:$4 sm:$0xff]   ;;  %v4167_v61 = vld [vmem:[#allocation6 + $0x420] ss:$40 sps:$4 sm:$0xff]   ;;  %v4178_v59 = vld [vmem:[#allocation6 + $0x3dc] ss:$40 sps:$4 sm:$0xff]  }
 0x196   :  { %v1631_v7 = vsel %vm1590_vm9, %v1630_v29, %v1629_v6  ;;  %v1621_v30 = vsel %vm1590_vm9, %v1620_v8, %v1619_v47  ;;  %v4170_v42 = vld [vmem:[#allocation6 + $0x428] ss:$40 sps:$4 sm:$0xff]   ;;  %v4175_v51 = vld [vmem:[#allocation6 + $0x3d4] ss:$40 sps:$4 sm:$0xff]   ;;  %v4176_v21 = vld [vmem:[#allocation6 + $0x3d8] ss:$40 sps:$4 sm:$0xff]  }
 0x197   :  { %v4824_v43 = vpack.c.b16 %v1631_v7, %v1611_v14  ;;  %v4826_v0 = vpack.c.b16 %v1621_v30, %v1597_v1  ;;  %v4124_v14 = vld [vmem:[#allocation6 + $0x1ac] ss:$40 sps:$4 sm:$0xff]   ;;  %v4143_v1 = vld [vmem:[#allocation6 + $0x60] ss:$40 sps:$4 sm:$0xff]   ;;  %v4173_v60 = vld [vmem:[#allocation6 + $0x3d0] ss:$40 sps:$4 sm:$0xff]  }
 0x198   :  { %v4181_v38 = vld [vmem:[#allocation6 + $0x384] ss:$40 sps:$4 sm:$0xff]   ;;  %v4179_v33 = vld [vmem:[#allocation6 + $0x380] ss:$40 sps:$4 sm:$0xff]   ;;  %v4187_v34 = vld [vmem:[#allocation6 + $0x334] ss:$40 sps:$4 sm:$0xff]  }
 0x199   :  { %2468 = vmatprep.mubr.bf16.mxu0 %v4824_v43  ;;  %2511 = vmatprep.mubr.bf16.mxu1 %v4824_v43  ;;  %v4184_v16 = vld [vmem:[#allocation6 + $0x38c] ss:$40 sps:$4 sm:$0xff]   ;;  %v4182_v17 = vld [vmem:[#allocation6 + $0x388] ss:$40 sps:$4 sm:$0xff]   ;;  %v4190_v15 = vld [vmem:[#allocation6 + $0x33c] ss:$40 sps:$4 sm:$0xff]  }
 0x19a   :  { %2469 = vmatmul.mubr.bf16.vlgmr.msra.gmra.mxu0 %v4826_v0  ;;  %2512 = vmatmul.mubr.bf16.vlgmr.msra.gmra.mxu1 %v4826_v0  ;;  %v4185_v35 = vld [vmem:[#allocation6 + $0x330] ss:$40 sps:$4 sm:$0xff]   ;;  %v4193_v6 = vld [vmem:[#allocation6 + $0x2e4] ss:$40 sps:$4 sm:$0xff]   ;;  %v4191_v47 = vld [vmem:[#allocation6 + $0x2e0] ss:$40 sps:$4 sm:$0xff]  }
 0x19b   :  { %2523 = vmatpush1.bf16.msra.mxu0 %v4107_v18  ;;  %2566 = vmatpush1.bf16.msra.mxu1 %v4110_v36  ;;  %v4188_v5 = vld [vmem:[#allocation6 + $0x338] ss:$40 sps:$4 sm:$0xff]   ;;  %v4196_v29 = vld [vmem:[#allocation6 + $0x2ec] ss:$40 sps:$4 sm:$0xff]   ;;  %v4194_v8 = vld [vmem:[#allocation6 + $0x2e8] ss:$40 sps:$4 sm:$0xff]  }
 0x19c   :  { %2554 = vmatprep.mubr.bf16.mxu0 %v4824_v43  ;;  %2597 = vmatprep.mubr.bf16.mxu1 %v4824_v43  ;;  %v4199_v7 = vld [vmem:[#allocation6 + $0x294] ss:$40 sps:$4 sm:$0xff]   ;;  %v4197_v18 = vld [vmem:[#allocation6 + $0x290] ss:$40 sps:$4 sm:$0xff]  }
 0x19d   :  { %2524 = vmatprep.subr.bf16.mxu0 %v4115_v3  ;;  %2567 = vmatprep.subr.bf16.mxu1 %v4118_v20  ;;  %v4202_v30 = vld [vmem:[#allocation6 + $0x29c] ss:$40 sps:$4 sm:$0xff]   ;;  %v4200_v36 = vld [vmem:[#allocation6 + $0x298] ss:$40 sps:$4 sm:$0xff]  }
 0x19e   :  { %v4205_v3 = vld [vmem:[#allocation6 + $0x254] ss:$40 sps:$4 sm:$0xff]   ;;  %v4203_v20 = vld [vmem:[#allocation6 + $0x250] ss:$40 sps:$4 sm:$0xff]  }
 0x19f   :  { %2525 = vmatpush1.bf16.msra.mxu0 %v4113_v49  ;;  %2568 = vmatpush1.bf16.msra.mxu1 %v4116_v4  ;;  %v4208_v49 = vld [vmem:[#allocation6 + $0x204] ss:$40 sps:$4 sm:$0xff]   ;;  %v4206_v4 = vld [vmem:[#allocation6 + $0x200] ss:$40 sps:$4 sm:$0xff]  }
 0x1a0   :  { %2526 = vmatprep.subr.bf16.mxu0 %v4121_v56  ;;  %2569 = vmatprep.subr.bf16.mxu1 %v4124_v14  ;;  %v4211_v56 = vld [vmem:[#allocation6 + $0x1b4] ss:$40 sps:$4 sm:$0xff]   ;;  %v4209_v14 = vld [vmem:[#allocation6 + $0x1b0] ss:$40 sps:$4 sm:$0xff]  }
 0x1a3   :  { %2527 = vmatpush1.bf16.msra.mxu0 %v4119_v10  ;;  %2570 = vmatpush1.bf16.msra.mxu1 %v4122_v31  ;;  %v4214_v10 = vld [vmem:[#allocation6 + $0x164] ss:$40 sps:$4 sm:$0xff]   ;;  %v4212_v31 = vld [vmem:[#allocation6 + $0x160] ss:$40 sps:$4 sm:$0xff]  }
 0x1a4   :  { %2528 = vmatprep.subr.bf16.mxu0 %v4127_v32  ;;  %2571 = vmatprep.subr.bf16.mxu1 %v4130_v52  ;;  %v4217_v32 = vld [vmem:[#allocation6 + $0x114] ss:$40 sps:$4 sm:$0xff]   ;;  %v4215_v52 = vld [vmem:[#allocation6 + $0x110] ss:$40 sps:$4 sm:$0xff]  }
 0x1a7   :  { %2529 = vmatpush1.bf16.msra.mxu0 %v4125_v19  ;;  %2572 = vmatpush1.bf16.msra.mxu1 %v4128_v28  ;;  %v4220_v19 = vld [vmem:[#allocation6 + $0xc4] ss:$40 sps:$4 sm:$0xff]   ;;  %v4218_v28 = vld [vmem:[#allocation6 + $0xc0] ss:$40 sps:$4 sm:$0xff]  }
 0x1a8   :  { %2530 = vmatprep.subr.bf16.mxu0 %v4133_v57  ;;  %2573 = vmatprep.subr.bf16.mxu1 %v4136_v41  ;;  %v4223_v57 = vld [vmem:[#allocation6 + $0x74] ss:$40 sps:$4 sm:$0xff]   ;;  %v4226_v41 = vld [vmem:[#allocation6 + $0x24] ss:$40 sps:$4 sm:$0xff]  }
 0x1ab   :  { %2531 = vmatpush1.bf16.msra.mxu0 %v4131_v44  ;;  %2574 = vmatpush1.bf16.msra.mxu1 %v4134_v23  ;;  %v4224_v44 = vld [vmem:[#allocation6 + $0x20] ss:$40 sps:$4 sm:$0xff]   ;;  %v4229_v23 = vld [vmem:[#allocation6 + $0x4d4] ss:$40 sps:$4 sm:$0xff]  }
 0x1ac   :  { %2532 = vmatprep.subr.bf16.mxu0 %v4139_v48  ;;  %2575 = vmatprep.subr.bf16.mxu1 %v4142_v50  ;;  %v4227_v48 = vld [vmem:[#allocation6 + $0x4d0] ss:$40 sps:$4 sm:$0xff]   ;;  %v4232_v50 = vld [vmem:[#allocation6 + $0x484] ss:$40 sps:$4 sm:$0xff]  }
 0x1af   :  { %2533 = vmatpush1.bf16.msra.mxu0 %v4137_v53  ;;  %2576 = vmatpush1.bf16.msra.mxu1 %v4140_v45  ;;  %v4230_v53 = vld [vmem:[#allocation6 + $0x480] ss:$40 sps:$4 sm:$0xff]   ;;  %v4235_v45 = vld [vmem:[#allocation6 + $0x434] ss:$40 sps:$4 sm:$0xff]  }
 0x1b0   :  { %2534 = vmatprep.subr.bf16.mxu0 %v4145_v58  ;;  %2577 = vmatprep.subr.bf16.mxu1 %v4148_v24  ;;  %v4233_v58 = vld [vmem:[#allocation6 + $0x430] ss:$40 sps:$4 sm:$0xff]   ;;  %v4238_v24 = vld [vmem:[#allocation6 + $0x3e4] ss:$40 sps:$4 sm:$0xff]  }
 0x1b3   :  { %2535 = vmatpush1.bf16.msra.mxu0 %v4143_v1  ;;  %2578 = vmatpush1.bf16.msra.mxu1 %v4146_v9  ;;  %v4236_v1 = vld [vmem:[#allocation6 + $0x3e0] ss:$40 sps:$4 sm:$0xff]   ;;  %v4241_v9 = vld [vmem:[#allocation6 + $0x394] ss:$40 sps:$4 sm:$0xff]  }
 0x1b4   :  { %2536 = vmatprep.subr.bf16.mxu0 %v4151_v26  ;;  %2579 = vmatprep.subr.bf16.mxu1 %v4154_v39  ;;  %v4239_v26 = vld [vmem:[#allocation6 + $0x390] ss:$40 sps:$4 sm:$0xff]   ;;  %v4244_v39 = vld [vmem:[#allocation6 + $0x344] ss:$40 sps:$4 sm:$0xff]  }
 0x1b7   :  { %2537 = vmatpush1.bf16.msra.mxu0 %v4149_v25  ;;  %2580 = vmatpush1.bf16.msra.mxu1 %v4152_v40  ;;  %v4242_v25 = vld [vmem:[#allocation6 + $0x340] ss:$40 sps:$4 sm:$0xff]   ;;  %v4247_v40 = vld [vmem:[#allocation6 + $0x2f4] ss:$40 sps:$4 sm:$0xff]  }
 0x1b8   :  { %2538 = vmatprep.subr.bf16.mxu0 %v4157_v22  ;;  %2581 = vmatprep.subr.bf16.mxu1 %v4160_v12  ;;  %v4245_v22 = vld [vmem:[#allocation6 + $0x2f0] ss:$40 sps:$4 sm:$0xff]   ;;  %v4250_v12 = vld [vmem:[#allocation6 + $0x2a4] ss:$40 sps:$4 sm:$0xff]  }
 0x1bb   :  { %2539 = vmatpush2.bf16.msra.mxu0 %v4155_v11  ;;  %2582 = vmatpush2.bf16.msra.mxu1 %v4158_v46  ;;  %v4248_v11 = vld [vmem:[#allocation6 + $0x2a0] ss:$40 sps:$4 sm:$0xff]   ;;  %v4251_v46 = vld [vmem:[#allocation7 + $0xb8] sm:$0xff]  }
 0x1bc   :  { %2540 = vmatprep.subr.bf16.mxu0 %v4163_v2  ;;  %2583 = vmatprep.subr.bf16.mxu1 %v4166_v54  ;;  %v4252_v2 = vld [vmem:[#allocation7 + $0xf8] sm:$0xff]   ;;  %v4420_v54 = vmov 0.0  }
 0x1bf   :  { %2541 = vmatpush2.bf16.msra.mxu0 %v4161_v27  ;;  %2584 = vmatpush2.bf16.msra.mxu1 %v4164_v62  ;;  %v4253_v27 = vld [vmem:[#allocation7 + $0xb0] sm:$0xff]  }
 0x1c0   :  { %2542 = vmatprep.subr.bf16.mxu0 %v4169_v63  ;;  %2585 = vmatprep.subr.bf16.mxu1 %v4172_v55  ;;  %v4254_v62 = vld [vmem:[#allocation7 + $0xf0] sm:$0xff]   ;;  %v4256_v63 = vld [vmem:[#allocation7 + $0xe8] sm:$0xff]   ;;  %v4257_v55 = vld [vmem:[#allocation7 + $0xa0] sm:$0xff]  }
 0x1c3   :  { %2543 = vmatpush2.bf16.msra.mxu0 %v4167_v61  ;;  %2586 = vmatpush2.bf16.msra.mxu1 %v4170_v42  ;;  %v4258_v61 = vld [vmem:[#allocation7 + $0xe0] sm:$0xff]   ;;  %v4259_v42 = vld [vmem:[#allocation7 + $0x98] sm:$0xff]  }
 0x1c4   :  { %2544 = vmatprep.subr.bf16.mxu0 %v4175_v51  ;;  %2587 = vmatprep.subr.bf16.mxu1 %v4178_v59  ;;  %v4260_v51 = vld [vmem:[#allocation7 + $0xd8] sm:$0xff]   ;;  %v4261_v59 = vld [vmem:[#allocation7 + $0x90] sm:$0xff]  }
 0x1c7   :  { %2545 = vmatpush2.bf16.msra.mxu0 %v4173_v60  ;;  %2588 = vmatpush2.bf16.msra.mxu1 %v4176_v21  ;;  %v4262_v60 = vld [vmem:[#allocation7 + $0xd0] sm:$0xff]   ;;  %v4263_v21 = vld [vmem:[#allocation7 + $0x88] sm:$0xff]  }
 0x1c8   :  { %2546 = vmatprep.subr.bf16.mxu0 %v4181_v38  ;;  %2589 = vmatprep.subr.bf16.mxu1 %v4184_v16  ;;  %v4264_v38 = vld [vmem:[#allocation7 + $0xc8] sm:$0xff]   ;;  %v4265_v16 = vld [vmem:[#allocation7 + $0x80] sm:$0xff]  }
 0x1cb   :  { %2547 = vmatpush2.bf16.msra.mxu0 %v4179_v33  ;;  %2590 = vmatpush2.bf16.msra.mxu1 %v4182_v17  ;;  %v4266_v33 = vld [vmem:[#allocation7 + $0xc0] sm:$0xff]  }
 0x1cc   :  { %2548 = vmatprep.subr.bf16.mxu0 %v4187_v34  ;;  %2591 = vmatprep.subr.bf16.mxu1 %v4190_v15 }
 0x1cf   :  { %2549 = vmatpush2.bf16.msra.mxu0 %v4185_v35  ;;  %2592 = vmatpush2.bf16.msra.mxu1 %v4188_v5 }
 0x1d0   :  { %2550 = vmatprep.subr.bf16.mxu0 %v4193_v6  ;;  %2593 = vmatprep.subr.bf16.mxu1 %v4196_v29 }
 0x1d3   :  { %2551 = vmatpush2.bf16.msra.mxu0 %v4191_v47  ;;  %2594 = vmatpush2.bf16.msra.mxu1 %v4194_v8 }
 0x1d4   :  { %2552 = vmatprep.subr.bf16.mxu0 %v4199_v7  ;;  %2595 = vmatprep.subr.bf16.mxu1 %v4202_v30 }
 0x1d7   :  { %2553 = vmatpush2.bf16.msra.mxu0 %v4197_v18  ;;  %2596 = vmatpush2.bf16.msra.mxu1 %v4200_v36 }
 0x1d8   :  { %2608 = vmatprep.subr.bf16.mxu0 %v4205_v3  ;;  %3814 = vmatprep.subr.bf16.mxu1 %v4420_v54 }
 0x1da   :  { %2555 = vmatmul.mubr.bf16.vlgmr.msra.gmra.mxu0 %v4826_v0  ;;  %2598 = vmatmul.mubr.bf16.vlgmr.msra.gmra.mxu1 %v4826_v0 }
 0x1db   :  { %2609 = vmatpush1.bf16.msra.mxu0 %v4203_v20  ;;  %2640 = vmatprep.mubr.bf16.mxu0 %v4824_v43  ;;  %v4221_v43 = vld [vmem:[#allocation6 + $0x70] ss:$40 sps:$4 sm:$0xff]  }
 0x1dc   :  { %2610 = vmatprep.subr.bf16.mxu0 %v4208_v49  ;;  %3815 = vmatpush3.bf16.msra.mxu1 %v4251_v46 }
 0x1dd   :  { %3816 = vmatprep.subr.bf16.mxu1 %v4420_v54  ;;  %3830 = vmatprep.mubr.msk.bf16.mxu1 %vm4421_vm12, %v4420_v54 }
 0x1df   :  { %2611 = vmatpush1.bf16.msra.mxu0 %v4206_v4 }
 0x1e0   :  { %2612 = vmatprep.subr.bf16.mxu0 %v4211_v56  ;;  %3817 = vmatpush3.bf16.msra.mxu1 %v4253_v27 }
 0x1e1   :  { %3818 = vmatprep.subr.bf16.mxu1 %v4420_v54 }
 0x1e3   :  { %2613 = vmatpush1.bf16.msra.mxu0 %v4209_v14 }
 0x1e4   :  { %2614 = vmatprep.subr.bf16.mxu0 %v4214_v10 }
 0x1e7   :  { %2615 = vmatpush1.bf16.msra.mxu0 %v4212_v31 }
 0x1e8   :  { %2616 = vmatprep.subr.bf16.mxu0 %v4217_v32 }
 0x1eb   :  { %2617 = vmatpush1.bf16.msra.mxu0 %v4215_v52 }
 0x1ec   :  { %2618 = vmatprep.subr.bf16.mxu0 %v4220_v19 }
 0x1ef   :  { %2619 = vmatpush1.bf16.msra.mxu0 %v4218_v28 }
 0x1f0   :  { %2620 = vmatprep.subr.bf16.mxu0 %v4223_v57 }
 0x1f3   :  { %2621 = vmatpush1.bf16.msra.mxu0 %v4221_v43 }
 0x1f4   :  { %2622 = vmatprep.subr.bf16.mxu0 %v4226_v41 }
 0x1f7   :  { %2623 = vmatpush1.bf16.msra.mxu0 %v4224_v44 }
 0x1f8   :  { %2624 = vmatprep.subr.bf16.mxu0 %v4229_v23 }
 0x1fb   :  { %2625 = vmatpush2.bf16.msra.mxu0 %v4227_v48 }
 0x1fc   :  { %2626 = vmatprep.subr.bf16.mxu0 %v4232_v50 }
 0x1ff   :  { %2627 = vmatpush2.bf16.msra.mxu0 %v4230_v53 }
 0x200   :  { %2628 = vmatprep.subr.bf16.mxu0 %v4235_v45 }
 0x203   :  { %2629 = vmatpush2.bf16.msra.mxu0 %v4233_v58 }
 0x204   :  { %2630 = vmatprep.subr.bf16.mxu0 %v4238_v24 }
 0x207   :  { %2631 = vmatpush2.bf16.msra.mxu0 %v4236_v1 }
 0x208   :  { %2632 = vmatprep.subr.bf16.mxu0 %v4241_v9 }
 0x20b   :  { %2633 = vmatpush2.bf16.msra.mxu0 %v4239_v26 }
 0x20c   :  { %2634 = vmatprep.subr.bf16.mxu0 %v4244_v39 }
 0x20f   :  { %2635 = vmatpush2.bf16.msra.mxu0 %v4242_v25 }
 0x210   :  { %2636 = vmatprep.subr.bf16.mxu0 %v4247_v40 }
 0x213   :  { %2637 = vmatpush2.bf16.msra.mxu0 %v4245_v22 }
 0x214   :  { %2638 = vmatprep.subr.bf16.mxu0 %v4250_v12 }
 0x217   :  { %2639 = vmatpush2.bf16.msra.mxu0 %v4248_v11 }
 0x218   :  { %3854 = vmatprep.subr.bf16.mxu0 %v4420_v54 }
 0x21a   :  { %2641 = vmatmul.mubr.bf16.vlgmr.msra.gmra.mxu0 %v4826_v0  ;;  %v4255_v0 = vld [vmem:[#allocation7 + $0xa8] sm:$0xff]  }
 0x21b   :  { %3855 = vmatpush3.bf16.msra.mxu0 %v4252_v2  ;;  %3819 = vmatpush3.bf16.msra.mxu1 %v4255_v0 }
 0x21c   :  { %3856 = vmatprep.subr.bf16.mxu0 %v4420_v54  ;;  %3820 = vmatprep.subr.bf16.mxu1 %v4420_v54 }
 0x21d   :  { %3870 = vmatprep.mubr.msk.bf16.mxu0 %vm4421_vm12, %v4420_v54 }
 0x21f   :  { %3857 = vmatpush3.bf16.msra.mxu0 %v4254_v62  ;;  %3821 = vmatpush3.bf16.msra.mxu1 %v4257_v55 }
 0x220   :  { %3858 = vmatprep.subr.bf16.mxu0 %v4420_v54  ;;  %3822 = vmatprep.subr.bf16.mxu1 %v4420_v54 }
 0x223   :  { %3859 = vmatpush3.bf16.msra.mxu0 %v4256_v63  ;;  %3823 = vmatpush3.bf16.msra.mxu1 %v4259_v42 }
 0x224   :  { %3860 = vmatprep.subr.bf16.mxu0 %v4420_v54  ;;  %3824 = vmatprep.subr.bf16.mxu1 %v4420_v54 }
 0x227   :  { %3861 = vmatpush3.bf16.msra.mxu0 %v4258_v61  ;;  %3825 = vmatpush3.bf16.msra.mxu1 %v4261_v59  ;;  %v4875_v61 = vld [vmem:[#allocation9 + $0x1] ss:$0 sm:$0xff] }
 0x228   :  { %3862 = vmatprep.subr.bf16.mxu0 %v4420_v54  ;;  %3826 = vmatprep.subr.bf16.mxu1 %v4420_v54 }
 0x22b   :  { %3863 = vmatpush3.bf16.msra.mxu0 %v4260_v51  ;;  %3827 = vmatpush3.bf16.msra.mxu1 %v4263_v21  ;;  %v4879_v51 = vrot.slane %v4875_v61, %v4640_v37 }
 0x22c   :  { %3864 = vmatprep.subr.bf16.mxu0 %v4420_v54  ;;  %3828 = vmatprep.subr.bf16.mxu1 %v4420_v54 }
 0x22d   :  { %v2801_v21 = vcombine.high %v4879_v51, %v4879_v51 }
 0x22f   :  { %3865 = vmatpush3.bf16.msra.mxu0 %v4262_v60  ;;  %3829 = vmatpush3.bf16.msra.mxu1 %v4265_v16 }
 0x230   :  { %3866 = vmatprep.subr.bf16.mxu0 %v4420_v54  ;;  %3834 = vmatprep.subr.bf16.mxu1 %v4420_v54 }
 0x233   :  { %3867 = vmatpush3.bf16.msra.mxu0 %v4264_v38 }
 0x234   :  { %3868 = vmatprep.subr.bf16.mxu0 %v4420_v54 }
 0x237   :  { %3869 = vmatpush3.bf16.msra.mxu0 %v4266_v33 }
 0x238   :  { %3894 = vmatprep.subr.bf16.mxu0 %v4420_v54 }
 0x25a   :  { %v2470_v17 = vpop.f32.mrf.mxu0  ;;  %v2513_v15 = vpop.f32.mrf.mxu1 }
 0x25b   :  { %v2656_v56 = vrot.slane %v2513_v15, 1 }
 0x25c   :  { %v2472_v34 = vpop.f32.mrf.mxu0  ;;  %v2515_v5 = vpop.f32.mrf.mxu1 }
 0x25d   :  { %v2659_v14 = vrot.slane %v2515_v5, 1 }
 0x25e   :  { %v4860_v35 = vpop.f32.mrf.mxu0  ;;  %v4862_v29 = vpop.f32.mrf.mxu1 }
 0x25f   :  { %v2657_v20 = vrot.slane %v4862_v29, 1 }
 0x260   :  { %v2476_v6 = vpop.f32.mrf.mxu0  ;;  %v2519_v8 = vpop.f32.mrf.mxu1 }
 0x261   :  { %v2660_v49 = vrot.slane %v2519_v8, 1  ;;  %v2658_v32 = vsel %vm121_vm0, %v2656_v56, %v2657_v20 }
 0x262   :  { %v2666_v23 = vadd.f32 %v2658_v32, %v2470_v17  ;;  %v4269_v32 = vld [vmem:[#allocation7 + $0x30] sm:$0xff]  }
 0x263   :  { %v2661_v52 = vsel %vm121_vm0, %v2659_v14, %v2660_v49  ;;  %v2669_v29 = vadd.f32 %v2660_v49, %v2476_v6  ;;  %v4270_v6 = vld [vmem:[#allocation7 + $0x130] sm:$0xff]   ;;  %v4271_v49 = vld [vmem:[#allocation7 + $0x28] sm:$0xff]  }
 0x264   :  { %v2667_v48 = vadd.f32 %v2661_v52, %v2472_v34  ;;  %v2803_v34 = vrot.slane %v2801_v21, 1 }
 0x29a   :  { %v2556_v47 = vpop.f32.mrf.mxu0  ;;  %v2599_v30 = vpop.f32.mrf.mxu1 }
 0x29b   :  { %v2675_v19 = vrot.slane %v2556_v47, 2  ;;  %v2694_v58 = vrot.slane %v2599_v30, 3  ;;  %v2668_v30 = vadd.f32 %v2657_v20, %v4860_v35 }
 0x29c   :  { %v2558_v7 = vpop.f32.mrf.mxu0  ;;  %v2601_v36 = vpop.f32.mrf.mxu1 }
 0x29d   :  { %v2678_v28 = vrot.slane %v2558_v7, 2  ;;  %v2697_v26 = vrot.slane %v2601_v36, 3  ;;  %v4267_v7 = vld [vmem:[#allocation7 + $0x38] sm:$0xff]  }
 0x29e   :  { %v4864_v18 = vpop.f32.mrf.mxu0  ;;  %v4867_v4 = vpop.f32.mrf.mxu1 }
 0x29f   :  { %v2676_v10 = vrot.slane %v4864_v18, 2  ;;  %v2695_v50 = vrot.slane %v4867_v4, 3  ;;  %v4268_v4 = vld [vmem:[#allocation7 + $0x138] sm:$0xff]  }
 0x2a0   :  { %v2562_v3 = vpop.f32.mrf.mxu0  ;;  %v2605_v57 = vpop.f32.mrf.mxu1 }
 0x2a1   :  { %v2679_v31 = vrot.slane %v2562_v3, 2  ;;  %v2677_v41 = vsel %vm774_vm2, %v2675_v19, %v2676_v10  ;;  %v2698_v45 = vrot.slane %v2605_v57, 3  ;;  %v2696_v40 = vsel %vm2693_vm13, %v2694_v58, %v2695_v50 }
 0x2a2   :  { %v2685_v24 = vadd.f32 %v2677_v41, %v2666_v23  ;;  %v2687_v56 = vadd.f32 %v2676_v10, %v2668_v30  ;;  %v4298_v30 = vld [vmem:[#allocation7 + $0x140] sm:$0xff]  }
 0x2a3   :  { %v2680_v44 = vsel %vm774_vm2, %v2678_v28, %v2679_v31  ;;  %v2699_v12 = vsel %vm2693_vm13, %v2697_v26, %v2698_v45  ;;  %v2688_v18 = vadd.f32 %v2679_v31, %v2669_v29  ;;  %v4272_v31 = vld [vmem:[#allocation7 + $0x128] sm:$0xff]   ;;  %v4273_v28 = vld [vmem:[#allocation7 + $0x20] sm:$0xff]  }
 0x2a4   :  { %v2686_v1 = vadd.f32 %v2680_v44, %v2667_v48  ;;  %v2704_v27 = vadd.f32 %v2696_v40, %v2685_v24  ;;  %v2706_v35 = vadd.f32 %v2695_v50, %v2687_v56  ;;  %v4275_v44 = vld [vmem:[#allocation7 + $0x18] sm:$0xff]   ;;  %v4278_v24 = vld [vmem:[#allocation7 + $0x110] sm:$0xff]   ;;  %v4279_v26 = vld [vmem:[#allocation7 + $0x8] sm:$0xff]  }
 0x2a5   :  { %v2707_v52 = vadd.f32 %v2698_v45, %v2688_v18  ;;  %v4276_v48 = vld [vmem:[#allocation7 + $0x118] sm:$0xff]   ;;  %v4277_v45 = vld [vmem:[#allocation7 + $0x10] sm:$0xff]   ;;  %v4294_v29 = vld [vmem:[#allocation7 + $0x160] sm:$0xff]  }
 0x2a6   :  { %v2705_v62 = vadd.f32 %v2699_v12, %v2686_v1 }
 0x2da   :  { %v2642_v43 = vpop.f32.mrf.mxu0 }
 0x2db   :  { %v2713_v39 = vrot.slane %v2642_v43, 4  ;;  %v4274_v43 = vld [vmem:[#allocation7 + $0x120] sm:$0xff]  }
 0x2dc   :  { %v2644_v53 = vpop.f32.mrf.mxu0 }
 0x2dd   :  { %v2716_v11 = vrot.slane %v2644_v53, 4  ;;  %v2786_v53 = vcombine.high %v4875_v61, %v4875_v61  ;;  %v4287_v61 = vld [vmem:[#allocation7 + $0x58] sm:$0xff]  }
 0x2de   :  { %v2646_v9 = vpop.f32.mrf.mxu0 }
 0x2df   :  { %v2714_v25 = vrot.slane %v2646_v9, 4  ;;  %v2800_v9 = vrot.slane %v2786_v53, %v4640_v37 }
 0x2e0   :  { %v2648_v22 = vpop.f32.mrf.mxu0 }
 0x2e1   :  { %v2715_v46 = vsel %vm2712_vm14, %v2713_v39, %v2714_v25  ;;  %v2717_v2 = vrot.slane %v2648_v22, 4  ;;  %v2725_v10 = vadd.f32 %v2714_v25, %v2706_v35  ;;  %v4280_v25 = vld [vmem:[#allocation7 + $0x108] sm:$0xff]   ;;  %v4281_v22 = vld [vmem:[#allocation7] sm:$0xff]  }
 0x2e2   :  { %v2723_v63 = vadd.f32 %v2715_v46, %v2704_v27  ;;  %v4283_v46 = vld [vmem:[#allocation7 + $0x78] sm:$0xff]  }
 0x2e3   :  { %v2718_v0 = vsel %vm2712_vm14, %v2716_v11, %v2717_v2  ;;  %v2726_v20 = vadd.f32 %v2717_v2, %v2707_v52  ;;  %v4282_v11 = vld [vmem:[#allocation7 + $0x100] sm:$0xff]  }
 0x2e4   :  { %v2724_v55 = vadd.f32 %v2718_v0, %v2705_v62  ;;  %v4284_v62 = vld [vmem:[#allocation7 + $0x70] sm:$0xff]   ;;  %v4285_v0 = vld [vmem:[#allocation7 + $0x68] sm:$0xff]  }
 0x2e5   :  { %v2728_v19 = vmax.f32 %v2725_v10, %v2726_v20 }
 0x2e6   :  { %v2727_v42 = vmax.f32 %v2723_v63, %v2724_v55  ;;  %v4286_v63 = vld [vmem:[#allocation7 + $0x60] sm:$0xff]  }
 0x2e7   :  { %v2754_v41 = vrot.slane %v2728_v19, %v4640_v37 }
 0x2e8   :  { %v2731_v59 = vcombine.high %v2727_v42, %v2727_v42  ;;  %v2738_v57 = vrot.slane %v2727_v42, %v4640_v37 }
 0x2e9   :  { %v3710_v50 = vrot.slane %v2754_v41, 9 }
 0x2ea   :  { %v2745_v60 = vrot.slane %v2731_v59, %v4640_v37  ;;  %v3706_v23 = vrot.slane %v2738_v57, 9  ;;  %v2746_v55 = vcombine.high %v2738_v57, %v2738_v57  ;;  %v4288_v59 = vld [vmem:[#allocation7 + $0x50] sm:$0xff]  }
 0x2eb   :  { %v2779_v1 = vmax.f32 %v2754_v41, %v3710_v50 }
 0x2ec   :  { %v3708_v38 = vrot.slane %v2745_v60, 9  ;;  %v2747_v16 = vcombine.high %v2745_v60, %v2745_v60  ;;  %v2775_v58 = vmax.f32 %v2738_v57, %v3706_v23  ;;  %v3707_v42 = vrot.slane %v2746_v55, 9 }
 0x2ed   :  { %v2813_v40 = vadd.f32 %v2800_v9, %v2779_v1  ;;  %v3371_v1 = vld [vmem:[#allocation9 + $0x3] sm:$0x1] }
 0x2ee   :  { %v2777_v33 = vmax.f32 %v2745_v60, %v3708_v38  ;;  %v3709_v17 = vrot.slane %v2747_v16, 9  ;;  %v2809_v39 = vadd.f32 %v4879_v51, %v2775_v58  ;;  %v2776_v60 = vmax.f32 %v2746_v55, %v3707_v42  ;;  %v4289_v38 = vld [vmem:[#allocation7 + $0x48] sm:$0xff]  }
 0x2ef   :  { %v2818_v37 = vmax.f32 %v2813_v40, 0.0 }
 0x2f0   :  { %v2811_v15 = vadd.f32 %v2801_v21, %v2777_v33  ;;  %v2778_v5 = vmax.f32 %v2747_v16, %v3709_v17  ;;  %v2814_v12 = vmax.f32 %v2809_v39, 0.0  ;;  %v2802_v21 = vrot.slane %v4879_v51, 1  ;;  %v4290_v33 = vld [vmem:[#allocation7 + $0x40] sm:$0xff]   ;;  %v4292_v51 = vld [vmem:[#allocation7 + $0x170] sm:$0xff]  }
 0x2f1   :  { %v3242_v27 = vpack.c.bf16 %v2818_v37, %v2818_v37 }
 0x2f2   :  { %v2816_v47 = vmax.f32 %v2811_v15, 0.0  ;;  %v2812_v8 = vadd.f32 %v2803_v34, %v2778_v5  ;;  %v2819_v2 = vpack.c.bf16 %v2814_v12, %v2814_v12  ;;  %v2810_v16 = vadd.f32 %v2802_v21, %v2776_v60  ;;  %v4291_v15 = vld [vmem:[#allocation7 + $0x178] sm:$0xff]   ;;  %v4293_v5 = vld [vmem:[#allocation7 + $0x168] sm:$0xff]  }
 0x2f4   :  { %v2854_v36 = vpack.c.bf16 %v2816_v47, %v2816_v47  ;;  %v2817_v3 = vmax.f32 %v2812_v8, 0.0  ;;  %v2815_v17 = vmax.f32 %v2810_v16, 0.0  ;;  %v4295_v47 = vld [vmem:[#allocation7 + $0x158] sm:$0xff]   ;;  %v4296_v8 = vld [vmem:[#allocation7 + $0x150] sm:$0xff]  }
 0x2f6   :  { %3831 = vmatmul.mubr.bf16.vlgmr.msra.gmra.mxu1 %v2854_v36  ;;  %v3048_v14 = vpack.c.bf16 %v2817_v3, %v2817_v3  ;;  %v2836_v34 = vpack.c.bf16 %v2815_v17, %v2815_v17 }
 0x2f7   :  { %3835 = vmatpush3.bf16.msra.mxu1 %v4267_v7  ;;  %3850 = vmatprep.mubr.msk.bf16.mxu1 %vm4421_vm12, %v4420_v54  ;;  %v4297_v7 = vld [vmem:[#allocation7 + $0x148] sm:$0xff]  }
 0x2f8   :  { %3871 = vmatmul.mubr.bf16.vlgmr.msra.gmra.mxu0 %v3048_v14  ;;  %3836 = vmatprep.subr.bf16.mxu1 %v4420_v54 }
 0x2f9   :  { %3895 = vmatpush3.bf16.msra.mxu0 %v4268_v4  ;;  %3910 = vmatprep.mubr.msk.bf16.mxu0 %vm4421_vm12, %v4420_v54 }
 0x2fa   :  { %3896 = vmatprep.subr.bf16.mxu0 %v4420_v54 }
 0x2fb   :  { %3837 = vmatpush3.bf16.msra.mxu1 %v4269_v32 }
 0x2fc   :  { %3838 = vmatprep.subr.bf16.mxu1 %v4420_v54 }
 0x2fd   :  { %3897 = vmatpush3.bf16.msra.mxu0 %v4270_v6 }
 0x2fe   :  { %3898 = vmatprep.subr.bf16.mxu0 %v4420_v54 }
 0x2ff   :  { %3839 = vmatpush3.bf16.msra.mxu1 %v4271_v49 }
 0x300   :  { %3840 = vmatprep.subr.bf16.mxu1 %v4420_v54 }
 0x301   :  { %3899 = vmatpush3.bf16.msra.mxu0 %v4272_v31 }
 0x302   :  { %3900 = vmatprep.subr.bf16.mxu0 %v4420_v54 }
 0x303   :  { %3841 = vmatpush3.bf16.msra.mxu1 %v4273_v28 }
 0x304   :  { %3842 = vmatprep.subr.bf16.mxu1 %v4420_v54 }
 0x305   :  { %3901 = vmatpush3.bf16.msra.mxu0 %v4274_v43 }
 0x306   :  { %3902 = vmatprep.subr.bf16.mxu0 %v4420_v54 }
 0x307   :  { %3843 = vmatpush3.bf16.msra.mxu1 %v4275_v44  ;;  %v3350_v44 = vld [vmem:[#allocation9 + $0x2] sm:$0x1] }
 0x308   :  { %3844 = vmatprep.subr.bf16.mxu1 %v4420_v54 }
 0x309   :  { %3903 = vmatpush3.bf16.msra.mxu0 %v4276_v48 }
 0x30a   :  { %3904 = vmatprep.subr.bf16.mxu0 %v4420_v54 }
 0x30b   :  { %3845 = vmatpush3.bf16.msra.mxu1 %v4277_v45 }
 0x30c   :  { %3846 = vmatprep.subr.bf16.mxu1 %v4420_v54 }
 0x30d   :  { %3905 = vmatpush3.bf16.msra.mxu0 %v4278_v24 }
 0x30e   :  { %3906 = vmatprep.subr.bf16.mxu0 %v4420_v54 }
 0x30f   :  { %3847 = vmatpush3.bf16.msra.mxu1 %v4279_v26 }
 0x310   :  { %3848 = vmatprep.subr.bf16.mxu1 %v4420_v54 }
 0x311   :  { %3907 = vmatpush3.bf16.msra.mxu0 %v4280_v25 }
 0x312   :  { %3908 = vmatprep.subr.bf16.mxu0 %v4420_v54 }
 0x313   :  { %3849 = vmatpush3.bf16.msra.mxu1 %v4281_v22 }
 0x314   :  { %3874 = vmatprep.subr.bf16.mxu1 %v4420_v54 }
 0x315   :  { %3909 = vmatpush3.bf16.msra.mxu0 %v4282_v11 }
 0x316   :  { %3851 = vmatmul.mubr.bf16.vlgmr.msra.gmra.mxu1 %v2819_v2 }
 0x317   :  { %3875 = vmatpush3.bf16.msra.mxu1 %v4283_v46  ;;  %3890 = vmatprep.mubr.msk.bf16.mxu1 %vm4421_vm12, %v4420_v54 }
 0x318   :  { %3911 = vmatmul.mubr.bf16.vlgmr.msra.gmra.mxu0 %v3242_v27  ;;  %3876 = vmatprep.subr.bf16.mxu1 %v4420_v54 }
 0x31b   :  { %3877 = vmatpush3.bf16.msra.mxu1 %v4284_v62 }
 0x31c   :  { %3878 = vmatprep.subr.bf16.mxu1 %v4420_v54 }
 0x31f   :  { %3879 = vmatpush3.bf16.msra.mxu1 %v4285_v0 }
 0x320   :  { %3880 = vmatprep.subr.bf16.mxu1 %v4420_v54 }
 0x323   :  { %3881 = vmatpush3.bf16.msra.mxu1 %v4286_v63 }
 0x324   :  { %3882 = vmatprep.subr.bf16.mxu1 %v4420_v54 }
 0x327   :  { %3883 = vmatpush3.bf16.msra.mxu1 %v4287_v61 }
 0x328   :  { %3884 = vmatprep.subr.bf16.mxu1 %v4420_v54 }
 0x32b   :  { %3885 = vmatpush3.bf16.msra.mxu1 %v4288_v59 }
 0x32c   :  { %3886 = vmatprep.subr.bf16.mxu1 %v4420_v54 }
 0x32f   :  { %3887 = vmatpush3.bf16.msra.mxu1 %v4289_v38 }
 0x330   :  { %3888 = vmatprep.subr.bf16.mxu1 %v4420_v54 }
 0x333   :  { %3889 = vmatpush3.bf16.msra.mxu1 %v4290_v33 }
 0x334   :  { %3914 = vmatprep.subr.bf16.mxu1 %v4420_v54 }
 0x336   :  { %3891 = vmatmul.mubr.bf16.vlgmr.msra.gmra.mxu1 %v2836_v34 }
 0x337   :  { %3930 = vmatprep.mubr.msk.bf16.mxu1 %vm4421_vm12, %v4420_v54  ;;  %3915 = vmatpush3.bf16.msra.mxu1 %v4291_v15 }
 0x338   :  { %3916 = vmatprep.subr.bf16.mxu1 %v4420_v54 }
 0x33b   :  { %3917 = vmatpush3.bf16.msra.mxu1 %v4292_v51 }
 0x33c   :  { %3918 = vmatprep.subr.bf16.mxu1 %v4420_v54 }
 0x33f   :  { %3919 = vmatpush3.bf16.msra.mxu1 %v4293_v5 }
 0x340   :  { %3920 = vmatprep.subr.bf16.mxu1 %v4420_v54 }
 0x343   :  { %3921 = vmatpush3.bf16.msra.mxu1 %v4294_v29 }
 0x344   :  { %3922 = vmatprep.subr.bf16.mxu1 %v4420_v54 }
 0x347   :  { %3923 = vmatpush3.bf16.msra.mxu1 %v4295_v47 }
 0x348   :  { %3924 = vmatprep.subr.bf16.mxu1 %v4420_v54 }
 0x34b   :  { %3925 = vmatpush3.bf16.msra.mxu1 %v4296_v8 }
 0x34c   :  { %3926 = vmatprep.subr.bf16.mxu1 %v4420_v54 }
 0x34f   :  { %3927 = vmatpush3.bf16.msra.mxu1 %v4297_v7 }
 0x350   :  { %3928 = vmatprep.subr.bf16.mxu1 %v4420_v54 }
 0x353   :  { %3929 = vmatpush3.bf16.msra.mxu1 %v4298_v30 }
 0x3b6   :  { %v2954_v18 = vpop.f32.mrf.mxu1 }
 0x3b8   :  { %v3832_v36 = vpop.f32.mrf.mxu1  ;;  %v3148_v3 = vpop.f32.mrf.mxu0 }
 0x3ba   :  { %v2957_v4 = vpop.f32.mrf.mxu1  ;;  %v3872_v56 = vpop.f32.mrf.mxu0 }
 0x3bc   :  { %v3833_v14 = vpop.f32.mrf.mxu1  ;;  %v3151_v32 = vpop.f32.mrf.mxu0 }
 0x3be   :  { %v3873_v52 = vpop.f32.mrf.mxu0 }
 0x3d6   :  { %v3042_v6 = vpop.f32.mrf.mxu1 }
 0x3d7   :  { %v3043_v57 = vadd.f32 %v3042_v6, %v2954_v18 }
 0x3d8   :  { %v3852_v35 = vpop.f32.mrf.mxu1  ;;  %v3342_v20 = vpop.f32.mrf.mxu0 }
 0x3d9   :  { %v3348_v43 = vadd.f32 %v3342_v20, %v3043_v57 }
 0x3da   :  { %v3045_v49 = vpop.f32.mrf.mxu1  ;;  %v3912_v10 = vpop.f32.mrf.mxu0 }
 0x3dc   :  { %v3853_v31 = vpop.f32.mrf.mxu1  ;;  %v3345_v19 = vpop.f32.mrf.mxu0 }
 0x3de   :  { %v3913_v28 = vpop.f32.mrf.mxu0 }
 0x3f6   :  { %v3236_v54 = vpop.f32.mrf.mxu1 }
 0x3f7   :  { %v3237_v41 = vadd.f32 %v3236_v54, %v3148_v3 }
 0x3f8   :  { %v3892_v23 = vpop.f32.mrf.mxu1 }
 0x3f9   :  { %v3349_v48 = vadd.f32 %v3348_v43, %v3237_v41 }
 0x3fa   :  { %v3239_v50 = vpop.f32.mrf.mxu1 }
 0x3fb   :  { %v3351_v53 = vadd.f32 %v3350_v44, %v3349_v48 }
 0x3fc   :  { %v3893_v45 = vpop.f32.mrf.mxu1 }
 0x3fd   :  { %v3352_v58 = vmax.f32 %v3351_v53, 0.0 }
 0x3ff   :  { %v3353_v24 = vpack.c.bf16 %v3352_v58, %v3352_v58 }
 0x401   :  { %3931 = vmatmul.mubr.bf16.vlgmr.msra.gmra.mxu1 %v3353_v24 }
 0x4c1   :  { %v3454_v9 = vpop.f32.mrf.mxu1 }
 0x4c2   :  { %v3455_v26 = vadd.f32 %v3454_v9, %v3371_v1 }
 0x4c3   :  { %v3932_v39 = vpop.f32.mrf.mxu1 }
 0x4c4   :  { %v3463_v25 = vrot.slane %v3455_v26, %v4967_v13 }
 0x4c5   :  { %v3457_v40 = vpop.f32.mrf.mxu1 }
 0x4c6   :  { %3464 = vst [vmem:[%s4939_s5] sm:$0xff] %v3463_v25 }
 0x4c7   :  { %v3933_v22 = vpop.f32.mrf.mxu1 }
 0x4c8   :  { %3469 = vsyncpa [#allocation3], 1 }
 0x4c9   :  { %3470 = vsyncpa [#allocation5], 1 }
 0x4ca   :  { %3471 = vsyncpa [#allocation8], 1 }

</bundles_post_ra>
